<compile_context>
chip_gen: v5e
topology: v5e:2x2
jax: 0.10.0
libtpu: 0.0.40
codegen_flags: <defaults>
</compile_context>

<pallas_src>
import functools

import jax
import jax.numpy as jnp
from jax.experimental import pallas as pl
from jax.experimental.pallas import tpu as pltpu

HIDDEN = 512


# ----------------------------------------------------------------------------- kernel
def _ffdqn_kernel(
    x_ref,                     # (BM, obs_len)      f32
    w1_ref, b1_ref,            # (obs_len, 2H) bf16, (1, 2H) f32   (fused wv1|wa1)
    wv2_ref, bv2_ref,          # (H, H) bf16, (1, H) f32
    wv3_ref, bv3_ref,          # (H, 1) bf16, (1, 1) f32
    wa2_ref, ba2_ref,          # (H, H) bf16, (1, H) f32
    wa3_ref, ba3_ref,          # (H, A) bf16 (mean-folded), (1, A) f32 (mean-folded)
    out_ref,                   # (BM, A) f32
):
    xb = x_ref[...].astype(jnp.bfloat16)

    # fused layer 1 for both heads, then split (512 is lane-aligned)
    h = jnp.dot(xb, w1_ref[...], preferred_element_type=jnp.float32) + b1_ref[...]
    h = jnp.maximum(h, 0.0)
    hv = h[:, :HIDDEN]
    ha = h[:, HIDDEN:]

    # ---- value head ----
    hv = jnp.maximum(
        jnp.dot(hv.astype(jnp.bfloat16), wv2_ref[...],
                preferred_element_type=jnp.float32) + bv2_ref[...],
        0.0,
    )
    val = jnp.dot(hv.astype(jnp.bfloat16), wv3_ref[...],
                  preferred_element_type=jnp.float32) + bv3_ref[...]          # (BM, 1)

    # ---- advantage head (mean already folded into wa3/ba3) ----
    ha = jnp.maximum(
        jnp.dot(ha.astype(jnp.bfloat16), wa2_ref[...],
                preferred_element_type=jnp.float32) + ba2_ref[...],
        0.0,
    )
    adv_c = jnp.dot(ha.astype(jnp.bfloat16), wa3_ref[...],
                    preferred_element_type=jnp.float32) + ba3_ref[...]        # (BM, A)

    out_ref[...] = val + adv_c


# ----------------------------------------------------------------------------- wrapper
def _round_up(n, m):
    return ((n + m - 1) // m) * m


def prepare_inference_params(params):
    """Host-side preprocessing: fuse layer-1 weights, fold the advantage mean into the
    last layer, and cast weights to bf16 (biases stay f32)."""
    w1 = jnp.concatenate([params["wv1"], params["wa1"]], axis=1).astype(jnp.bfloat16)
    b1 = jnp.concatenate([params["bv1"], params["ba1"]], axis=1).astype(jnp.float32)
    wa3c = (params["wa3"] - params["wa3"].mean(axis=1, keepdims=True)).astype(jnp.bfloat16)
    ba3c = (params["ba3"] - params["ba3"].mean()).astype(jnp.float32)
    return dict(
        w1=w1, b1=b1,
        wv2=params["wv2"].astype(jnp.bfloat16), bv2=params["bv2"].astype(jnp.float32),
        wv3=params["wv3"].astype(jnp.bfloat16), bv3=params["bv3"].astype(jnp.float32),
        wa2=params["wa2"].astype(jnp.bfloat16), ba2=params["ba2"].astype(jnp.float32),
        wa3=wa3c, ba3=ba3c,
    )


@functools.partial(jax.jit, static_argnames=("block_m",))
def simple_ffdqn_forward(x, prep, *, block_m=512):
    """x: (B, obs_len) f32.  prep: output of prepare_inference_params."""
    B, obs_len = x.shape
    actions_n = prep["wa3"].shape[1]

    # batch tile: multiple of 8 sublanes, capped at block_m (safe on v7x's 64 MiB VMEM)
    bm = min(block_m, _round_up(B, 8))
    Bp = _round_up(B, bm)
    if Bp != B:
        x = jnp.pad(x, ((0, Bp - B), (0, 0)))
    grid = (Bp // bm,)

    def const_spec(a):
        return pl.BlockSpec(a.shape, lambda i: (0,) * a.ndim)

    in_specs = [
        pl.BlockSpec((bm, obs_len), lambda i: (i, 0)),         # x: streamed per tile
        const_spec(prep["w1"]),  const_spec(prep["b1"]),       # weights/biases: resident
        const_spec(prep["wv2"]), const_spec(prep["bv2"]),
        const_spec(prep["wv3"]), const_spec(prep["bv3"]),
        const_spec(prep["wa2"]), const_spec(prep["ba2"]),
        const_spec(prep["wa3"]), const_spec(prep["ba3"]),
    ]
    out_spec = pl.BlockSpec((bm, actions_n), lambda i: (i, 0))

    out = pl.pallas_call(
        _ffdqn_kernel,
        out_shape=jax.ShapeDtypeStruct((Bp, actions_n), jnp.float32),
        grid=grid,
        in_specs=in_specs,
        out_specs=out_spec,
        compiler_params=pltpu.CompilerParams(
            dimension_semantics=("parallel",),
            vmem_limit_bytes=32 << 20,
        ),
    )(
        x,
        prep["w1"], prep["b1"],
        prep["wv2"], prep["bv2"],
        prep["wv3"], prep["bv3"],
        prep["wa2"], prep["ba2"],
        prep["wa3"], prep["ba3"],
    )
    return out[:B]


# ----------------------------------------------------------------------------- init + refs
def init_params(key, obs_len, actions_n):
    """PyTorch nn.Linear-style init, stored as (in_features, out_features) f32."""
    def linear(k, fan_in, fan_out):
        kw, kb = jax.random.split(k)
        bound = 1.0 / jnp.sqrt(jnp.float32(fan_in))
        w = jax.random.uniform(kw, (fan_in, fan_out), jnp.float32, -bound, bound)
        b = jax.random.uniform(kb, (1, fan_out), jnp.float32, -bound, bound)
        return w, b

    keys = jax.random.split(key, 6)
    wv1, bv1 = linear(keys[0], obs_len, HIDDEN)
    wv2, bv2 = linear(keys[1], HIDDEN, HIDDEN)
    wv3, bv3 = linear(keys[2], HIDDEN, 1)
    wa1, ba1 = linear(keys[3], obs_len, HIDDEN)
    wa2, ba2 = linear(keys[4], HIDDEN, HIDDEN)
    wa3, ba3 = linear(keys[5], HIDDEN, actions_n)
    return dict(
        wv1=wv1, bv1=bv1, wv2=wv2, bv2=bv2, wv3=wv3, bv3=bv3,
        wa1=wa1, ba1=ba1, wa2=wa2, ba2=ba2, wa3=wa3, ba3=ba3,
    )


def reference_forward_f32(x, p):
    """Pure-JAX f32 reference matching PyTorch forward semantics exactly."""
    hv = jax.nn.relu(x @ p["wv1"] + p["bv1"])
    hv = jax.nn.relu(hv @ p["wv2"] + p["bv2"])
    val = hv @ p["wv3"] + p["bv3"]
    ha = jax.nn.relu(x @ p["wa1"] + p["ba1"])
    ha = jax.nn.relu(ha @ p["wa2"] + p["ba2"])
    adv = ha @ p["wa3"] + p["ba3"]
    return val + adv - adv.mean(axis=1, keepdims=True)


def reference_forward_bf16(x, prep):
    """Reference with identical bf16 weight quantization / f32 accumulation as the kernel."""
    xb = x.astype(jnp.bfloat16)
    h = jax.nn.relu(jnp.dot(xb, prep["w1"], preferred_element_type=jnp.float32) + prep["b1"])
    hv, ha = h[:, :HIDDEN], h[:, HIDDEN:]
    hv = jax.nn.relu(jnp.dot(hv.astype(jnp.bfloat16), prep["wv2"],
                             preferred_element_type=jnp.float32) + prep["bv2"])
    val = jnp.dot(hv.astype(jnp.bfloat16), prep["wv3"],
                  preferred_element_type=jnp.float32) + prep["bv3"]
    ha = jax.nn.relu(jnp.dot(ha.astype(jnp.bfloat16), prep["wa2"],
                             preferred_element_type=jnp.float32) + prep["ba2"])
    adv = jnp.dot(ha.astype(jnp.bfloat16), prep["wa3"],
                  preferred_element_type=jnp.float32) + prep["ba3"]
    return val + adv


# ----------------------------------------------------------------------------- demo
if __name__ == "__main__":
    obs_len = 32
    actions_n = 8
    batch = 2

    key = jax.random.PRNGKey(0)
    kx, kp = jax.random.split(key)
    x = jax.random.normal(kx, (batch, obs_len), dtype=jnp.float32)
    params = init_params(kp, obs_len, actions_n)
    prep = prepare_inference_params(params)

    out = simple_ffdqn_forward(x, prep)
    out = jax.block_until_ready(out)
    assert out.shape == (batch, actions_n)

    # exactness vs. a reference using the identical bf16 weight quantization
    ref_bf16 = reference_forward_bf16(x, prep)
    assert jnp.allclose(out, ref_bf16, atol=1e-3, rtol=1e-3), "mismatch vs bf16 reference"

    # closeness vs. the full-f32 PyTorch-semantics reference (bf16 weight rounding only)
    ref_f32 = reference_forward_f32(x, params)
    assert jnp.allclose(out, ref_f32, atol=5e-2, rtol=5e-2), "mismatch vs f32 reference"

    print("KERNEL_OK")
</pallas_src>

<mosaic_0001>
module attributes {stable_mosaic.version = 11 : i64} {
  func.func @_ffdqn_kernel(%arg0: i32, %arg1: memref<8x32xf32, #tpu.memory_space<vmem>>, %arg2: memref<32x1024xbf16, #tpu.memory_space<vmem>>, %arg3: memref<1x1024xf32, #tpu.memory_space<vmem>>, %arg4: memref<512x512xbf16, #tpu.memory_space<vmem>>, %arg5: memref<1x512xf32, #tpu.memory_space<vmem>>, %arg6: memref<512x1xbf16, #tpu.memory_space<vmem>>, %arg7: memref<1x1xf32, #tpu.memory_space<vmem>>, %arg8: memref<512x512xbf16, #tpu.memory_space<vmem>>, %arg9: memref<1x512xf32, #tpu.memory_space<vmem>>, %arg10: memref<512x8xbf16, #tpu.memory_space<vmem>>, %arg11: memref<1x8xf32, #tpu.memory_space<vmem>>, %arg12: memref<8x8xf32, #tpu.memory_space<vmem>>) attributes {dimension_semantics = [#tpu.dimension_semantics<parallel>], iteration_bounds = array<i64: 1>, scalar_prefetch = 0 : i64, scratch_operands = 0 : i64, tpu.core_type = #tpu.core_type<tc>, window_params = [{transform_indices = @transform_0, window_bounds = array<i64: 8, 32>}, {pipeline_mode = #tpu.pipeline_mode<synchronous>, transform_indices = @transform_1, window_bounds = array<i64: 32, 1024>}, {pipeline_mode = #tpu.pipeline_mode<synchronous>, transform_indices = @transform_2, window_bounds = array<i64: 1, 1024>}, {pipeline_mode = #tpu.pipeline_mode<synchronous>, transform_indices = @transform_3, window_bounds = array<i64: 512, 512>}, {pipeline_mode = #tpu.pipeline_mode<synchronous>, transform_indices = @transform_4, window_bounds = array<i64: 1, 512>}, {pipeline_mode = #tpu.pipeline_mode<synchronous>, transform_indices = @transform_5, window_bounds = array<i64: 512, 1>}, {pipeline_mode = #tpu.pipeline_mode<synchronous>, transform_indices = @transform_6, window_bounds = array<i64: 1, 1>}, {pipeline_mode = #tpu.pipeline_mode<synchronous>, transform_indices = @transform_7, window_bounds = array<i64: 512, 512>}, {pipeline_mode = #tpu.pipeline_mode<synchronous>, transform_indices = @transform_8, window_bounds = array<i64: 1, 512>}, {pipeline_mode = #tpu.pipeline_mode<synchronous>, transform_indices = @transform_9, window_bounds = array<i64: 512, 8>}, {pipeline_mode = #tpu.pipeline_mode<synchronous>, transform_indices = @transform_10, window_bounds = array<i64: 1, 8>}, {transform_indices = @transform_11, window_bounds = array<i64: 8, 8>}]} {
    %c0 = arith.constant 0 : index
    %c0_0 = arith.constant 0 : index
    %0 = vector.load %arg1[%c0, %c0_0] : memref<8x32xf32, #tpu.memory_space<vmem>>, vector<8x32xf32>
    %1 = arith.truncf %0 : vector<8x32xf32> to vector<8x32xbf16>
    %c0_1 = arith.constant 0 : index
    %c0_2 = arith.constant 0 : index
    %2 = vector.load %arg2[%c0_1, %c0_2] : memref<32x1024xbf16, #tpu.memory_space<vmem>>, vector<32x1024xbf16>
    %cst = arith.constant dense<0.000000e+00> : vector<8x1024xf32>
    %3 = tpu.matmul %1, %2, %cst {dimension_numbers = #tpu.dot_dimension_numbers<[1], [0], [0], [1], [0, 0, 1, 1], [], []>} : vector<8x32xbf16>, vector<32x1024xbf16>, vector<8x1024xf32> -> vector<8x1024xf32>
    %c0_3 = arith.constant 0 : index
    %c0_4 = arith.constant 0 : index
    %4 = vector.load %arg3[%c0_3, %c0_4] : memref<1x1024xf32, #tpu.memory_space<vmem>>, vector<1x1024xf32>
    %5 = vector.broadcast %4 : vector<1x1024xf32> to vector<8x1024xf32>
    %6 = arith.addf %3, %5 : vector<8x1024xf32>
    %cst_5 = arith.constant 0.000000e+00 : f32
    %7 = vector.broadcast %cst_5 : f32 to vector<8x1024xf32>
    %8 = arith.maximumf %6, %7 : vector<8x1024xf32>
    %9 = vector.extract_strided_slice %8 {offsets = [0, 0], sizes = [8, 512], strides = [1, 1]} : vector<8x1024xf32> to vector<8x512xf32>
    %10 = vector.extract_strided_slice %8 {offsets = [0, 512], sizes = [8, 512], strides = [1, 1]} : vector<8x1024xf32> to vector<8x512xf32>
    %11 = arith.truncf %9 : vector<8x512xf32> to vector<8x512xbf16>
    %c0_6 = arith.constant 0 : index
    %c0_7 = arith.constant 0 : index
    %12 = vector.load %arg4[%c0_6, %c0_7] : memref<512x512xbf16, #tpu.memory_space<vmem>>, vector<512x512xbf16>
    %cst_8 = arith.constant dense<0.000000e+00> : vector<8x512xf32>
    %13 = tpu.matmul %11, %12, %cst_8 {dimension_numbers = #tpu.dot_dimension_numbers<[1], [0], [0], [1], [0, 0, 1, 1], [], []>} : vector<8x512xbf16>, vector<512x512xbf16>, vector<8x512xf32> -> vector<8x512xf32>
    %c0_9 = arith.constant 0 : index
    %c0_10 = arith.constant 0 : index
    %14 = vector.load %arg5[%c0_9, %c0_10] : memref<1x512xf32, #tpu.memory_space<vmem>>, vector<1x512xf32>
    %15 = vector.broadcast %14 : vector<1x512xf32> to vector<8x512xf32>
    %16 = arith.addf %13, %15 : vector<8x512xf32>
    %cst_11 = arith.constant 0.000000e+00 : f32
    %17 = vector.broadcast %cst_11 : f32 to vector<8x512xf32>
    %18 = arith.maximumf %16, %17 : vector<8x512xf32>
    %19 = arith.truncf %18 : vector<8x512xf32> to vector<8x512xbf16>
    %c0_12 = arith.constant 0 : index
    %c0_13 = arith.constant 0 : index
    %20 = vector.load %arg6[%c0_12, %c0_13] : memref<512x1xbf16, #tpu.memory_space<vmem>>, vector<512x1xbf16>
    %cst_14 = arith.constant dense<0.000000e+00> : vector<8x1xf32>
    %21 = tpu.matmul %19, %20, %cst_14 {dimension_numbers = #tpu.dot_dimension_numbers<[1], [0], [0], [1], [0, 0, 1, 1], [], []>} : vector<8x512xbf16>, vector<512x1xbf16>, vector<8x1xf32> -> vector<8x1xf32>
    %c0_15 = arith.constant 0 : index
    %c0_16 = arith.constant 0 : index
    %22 = vector.load %arg7[%c0_15, %c0_16] : memref<1x1xf32, #tpu.memory_space<vmem>>, vector<1x1xf32>
    %23 = vector.broadcast %22 : vector<1x1xf32> to vector<8x1xf32>
    %24 = arith.addf %21, %23 : vector<8x1xf32>
    %25 = arith.truncf %10 : vector<8x512xf32> to vector<8x512xbf16>
    %c0_17 = arith.constant 0 : index
    %c0_18 = arith.constant 0 : index
    %26 = vector.load %arg8[%c0_17, %c0_18] : memref<512x512xbf16, #tpu.memory_space<vmem>>, vector<512x512xbf16>
    %cst_19 = arith.constant dense<0.000000e+00> : vector<8x512xf32>
    %27 = tpu.matmul %25, %26, %cst_19 {dimension_numbers = #tpu.dot_dimension_numbers<[1], [0], [0], [1], [0, 0, 1, 1], [], []>} : vector<8x512xbf16>, vector<512x512xbf16>, vector<8x512xf32> -> vector<8x512xf32>
    %c0_20 = arith.constant 0 : index
    %c0_21 = arith.constant 0 : index
    %28 = vector.load %arg9[%c0_20, %c0_21] : memref<1x512xf32, #tpu.memory_space<vmem>>, vector<1x512xf32>
    %29 = vector.broadcast %28 : vector<1x512xf32> to vector<8x512xf32>
    %30 = arith.addf %27, %29 : vector<8x512xf32>
    %cst_22 = arith.constant 0.000000e+00 : f32
    %31 = vector.broadcast %cst_22 : f32 to vector<8x512xf32>
    %32 = arith.maximumf %30, %31 : vector<8x512xf32>
    %33 = arith.truncf %32 : vector<8x512xf32> to vector<8x512xbf16>
    %c0_23 = arith.constant 0 : index
    %c0_24 = arith.constant 0 : index
    %34 = vector.load %arg10[%c0_23, %c0_24] : memref<512x8xbf16, #tpu.memory_space<vmem>>, vector<512x8xbf16>
    %cst_25 = arith.constant dense<0.000000e+00> : vector<8x8xf32>
    %35 = tpu.matmul %33, %34, %cst_25 {dimension_numbers = #tpu.dot_dimension_numbers<[1], [0], [0], [1], [0, 0, 1, 1], [], []>} : vector<8x512xbf16>, vector<512x8xbf16>, vector<8x8xf32> -> vector<8x8xf32>
    %c0_26 = arith.constant 0 : index
    %c0_27 = arith.constant 0 : index
    %36 = vector.load %arg11[%c0_26, %c0_27] : memref<1x8xf32, #tpu.memory_space<vmem>>, vector<1x8xf32>
    %37 = vector.broadcast %36 : vector<1x8xf32> to vector<8x8xf32>
    %38 = arith.addf %35, %37 : vector<8x8xf32>
    %39 = vector.broadcast %24 : vector<8x1xf32> to vector<8x8xf32>
    %40 = arith.addf %39, %38 : vector<8x8xf32>
    %c0_28 = arith.constant 0 : index
    %c0_29 = arith.constant 0 : index
    %41 = vector.load %arg12[%c0_28, %c0_29] : memref<8x8xf32, #tpu.memory_space<vmem>>, vector<8x8xf32>
    tpu.vector_store %arg12[%c0_28, %c0_29], %40 {strides = array<i32>} : memref<8x8xf32, #tpu.memory_space<vmem>>, vector<8x8xf32>,
    return
  }
  func.func @transform_0(%arg0: i32) -> (i32, i32) {
    %c0_i32 = arith.constant 0 : i32
    %c0_i32_0 = arith.constant 0 : i32
    return %arg0, %c0_i32 : i32, i32
  }
  func.func @transform_1(%arg0: i32) -> (i32, i32) {
    %c0_i32 = arith.constant 0 : i32
    %c0_i32_0 = arith.constant 0 : i32
    %c0_i32_1 = arith.constant 0 : i32
    return %c0_i32, %c0_i32_0 : i32, i32
  }
  func.func @transform_2(%arg0: i32) -> (i32, i32) {
    %c0_i32 = arith.constant 0 : i32
    %c0_i32_0 = arith.constant 0 : i32
    %c0_i32_1 = arith.constant 0 : i32
    return %c0_i32, %c0_i32_0 : i32, i32
  }
  func.func @transform_3(%arg0: i32) -> (i32, i32) {
    %c0_i32 = arith.constant 0 : i32
    %c0_i32_0 = arith.constant 0 : i32
    %c0_i32_1 = arith.constant 0 : i32
    return %c0_i32, %c0_i32_0 : i32, i32
  }
  func.func @transform_4(%arg0: i32) -> (i32, i32) {
    %c0_i32 = arith.constant 0 : i32
    %c0_i32_0 = arith.constant 0 : i32
    %c0_i32_1 = arith.constant 0 : i32
    return %c0_i32, %c0_i32_0 : i32, i32
  }
  func.func @transform_5(%arg0: i32) -> (i32, i32) {
    %c0_i32 = arith.constant 0 : i32
    %c0_i32_0 = arith.constant 0 : i32
    %c0_i32_1 = arith.constant 0 : i32
    return %c0_i32, %c0_i32_0 : i32, i32
  }
  func.func @transform_6(%arg0: i32) -> (i32, i32) {
    %c0_i32 = arith.constant 0 : i32
    %c0_i32_0 = arith.constant 0 : i32
    %c0_i32_1 = arith.constant 0 : i32
    return %c0_i32, %c0_i32_0 : i32, i32
  }
  func.func @transform_7(%arg0: i32) -> (i32, i32) {
    %c0_i32 = arith.constant 0 : i32
    %c0_i32_0 = arith.constant 0 : i32
    %c0_i32_1 = arith.constant 0 : i32
    return %c0_i32, %c0_i32_0 : i32, i32
  }
  func.func @transform_8(%arg0: i32) -> (i32, i32) {
    %c0_i32 = arith.constant 0 : i32
    %c0_i32_0 = arith.constant 0 : i32
    %c0_i32_1 = arith.constant 0 : i32
    return %c0_i32, %c0_i32_0 : i32, i32
  }
  func.func @transform_9(%arg0: i32) -> (i32, i32) {
    %c0_i32 = arith.constant 0 : i32
    %c0_i32_0 = arith.constant 0 : i32
    %c0_i32_1 = arith.constant 0 : i32
    return %c0_i32, %c0_i32_0 : i32, i32
  }
  func.func @transform_10(%arg0: i32) -> (i32, i32) {
    %c0_i32 = arith.constant 0 : i32
    %c0_i32_0 = arith.constant 0 : i32
    %c0_i32_1 = arith.constant 0 : i32
    return %c0_i32, %c0_i32_0 : i32, i32
  }
  func.func @transform_11(%arg0: i32) -> (i32, i32) {
    %c0_i32 = arith.constant 0 : i32
    %c0_i32_0 = arith.constant 0 : i32
    return %arg0, %c0_i32 : i32, i32
  }
}

</mosaic_0001>

<bundles_post_ra>
// kernel: simple_ffdqn_forward.1
= control target key start
LH: loop header
LB: loop body
LE: loop exit
PB: predicated region body
PF: predicated region fallthrough
CT: control target
= control target key end

     0   :  { %s5188_s0 = inlined_call_operand.vmem [shape: f32[8,32], index: 0, kind: input, shape index: {}]   ;;  %s5189_s1 = inlined_call_operand.vmem [shape: bf16[32,1024], index: 1, kind: input, shape index: {}]   ;;  %s5190_s2 = inlined_call_operand.vmem [shape: f32[1,1024], index: 2, kind: input, shape index: {}]   ;;  %s5191_s3 = inlined_call_operand.hbm [shape: bf16[512,512], index: 3, kind: input, shape index: {}]   ;;  %s5192_s4 = inlined_call_operand.vmem [shape: f32[1,512], index: 4, kind: input, shape index: {}]   ;;  %s5193_s5 = inlined_call_operand.vmem [shape: bf16[512,1], index: 5, kind: input, shape index: {}]   ;;  %s5194_s6 = inlined_call_operand.<no memory space> [shape: f32[1,1], index: 6, kind: input, shape index: {}]   ;;  %s5195_s7 = inlined_call_operand.hbm [shape: bf16[512,512], index: 7, kind: input, shape index: {}]   ;;  %s5196_s8 = inlined_call_operand.vmem [shape: f32[1,512], index: 8, kind: input, shape index: {}]   ;;  %s5197_s9 = inlined_call_operand.vmem [shape: bf16[512,8], index: 9, kind: input, shape index: {}]   ;;  %s5198_s10 = inlined_call_operand.vmem [shape: f32[1,8], index: 10, kind: input, shape index: {}]   ;;  %s5199_s11 = inlined_call_operand.vmem [shape: f32[8,8], index: 11, kind: output, shape index: {}]  }
   0x1   :  { %v16_v0 = vstv %s5194_s6 }
   0x2   :  { %17 = vst [vmem:[#allocation2] sm:$0x1] %v16_v0 }
   0x3   :  { %18 = vsyncpa [#allocation4], 0  ;;  %s30_s21 = sshll.u32 %s5191_s3, 4  ;;  %s31_s21 = int_to_ptr.hbm [resolvable:$true] %s30_s21 }
   0x4   :  { %19 = vsyncpa [#allocation6], 0  ;;  %s4688_s22 = smov [#allocation3]   ;;  %s49_s26 = sshll.u32 %s5195_s7, 4  ;;  %s50_s26 = int_to_ptr.hbm [resolvable:$true] %s49_s26 }
   0x5   :  { %s32_s23 = sshll.u32 %s4688_s22, 4  ;;  %s4689_s27 = smov 256   ;;  %s33_s23 = int_to_ptr.vmem [resolvable:$true] %s32_s23 }
   0x6   :  { %s4690_s28 = smov 16   ;;  %s4691_s6 = smov [#allocation5]  }
   0x7   :  { %38 = dma.hbm_to_vmem [thread:$0]  %s31_s21, 16384, %s33_s23, [#allocation4], %s4689_s27, %s4689_s27, %s4690_s28  }
   0x8   :  { %s51_s29 = sshll.u32 %s4691_s6, 4  ;;  %s52_s29 = int_to_ptr.vmem [resolvable:$true] %s51_s29 }
   0x9   :  { %57 = dma.hbm_to_vmem [thread:$0]  %s50_s26, 16384, %s52_s29, [#allocation6], %s4689_s27, %s4689_s27, %s4690_s28  }
   0xa   :  { %4684 = dma.done.wait [#allocation4], 16384  }
   0xb   :  { %4685 = vsyncadd [#allocation4], 4294950912 }
   0xc   :  { %4686 = dma.done.wait [#allocation6], 16384  }
   0xd   :  { %4687 = vsyncadd [#allocation6], 4294950912  ;;  %v2973_v1 = vld [vmem:[%s5189_s1 + $0x40] sm:$0xf]  ;;  %v4299_v3 = vld [vmem:[%s5189_s1 + $0x44] sm:$0xf] }
   0xe   :  { %v4303_v2 = vld [vmem:[%s5189_s1 + $0x5c] sm:$0xf0]  ;;  %v2975_v5 = vld [vmem:[%s5189_s1 + $0x60] sm:$0xf0]  ;;  %v2981_v6 = vld [vmem:[%s5189_s1 + $0x48] sm:$0xf] }
   0xf   :  { %v2974_v4 = vor.u32 %v4303_v2, %v2973_v1  ;;  %v4304_v7 = vld [vmem:[%s5189_s1 + $0x64] sm:$0xf0]  ;;  %v2978_v8 = vor.u32 %v4299_v3, %v2975_v5  ;;  %v4300_v10 = vld [vmem:[%s5189_s1 + $0x4c] sm:$0xf]  ;;  %v2941_v12 = vld [vmem:[%s5189_s1] sm:$0xf] }
  0x10   :  { %v2982_v9 = vor.u32 %v4304_v7, %v2981_v6  ;;  %v2983_v11 = vld [vmem:[%s5189_s1 + $0x68] sm:$0xf0]  ;;  %v4295_v14 = vld [vmem:[%s5189_s1 + $0x1c] sm:$0xf0]  ;;  %v4291_v15 = vld [vmem:[%s5189_s1 + $0x4] sm:$0xf] }
  0x11   :  { %199 = vmatpush.bf16.msra.mxu0 %v2974_v4  ;;  %v2986_v13 = vor.u32 %v4300_v10, %v2983_v11  ;;  %v2943_v16 = vld [vmem:[%s5189_s1 + $0x20] sm:$0xf0]  ;;  %212 = vmatpush.bf16.msra.mxu1 %v2978_v8  ;;  %v2942_v17 = vor.u32 %v4295_v14, %v2941_v12  ;;  %v2949_v19 = vld [vmem:[%s5189_s1 + $0x8] sm:$0xf]  ;;  %v4292_v21 = vld [vmem:[%s5189_s1 + $0xc] sm:$0xf] }
  0x12   :  { %225 = vmatpush.bf16.msra.mxu2 %v2982_v9  ;;  %v2946_v18 = vor.u32 %v4291_v15, %v2943_v16  ;;  %v4296_v20 = vld [vmem:[%s5189_s1 + $0x24] sm:$0xf0]  ;;  %v2951_v23 = vld [vmem:[%s5189_s1 + $0x28] sm:$0xf0]  ;;  %v73_v24 = vld [vmem:[%s5188_s0] sm:$0xff]  ;;  %vm189_vm0 = vcmask 261120  }
  0x13   :  { %238 = vmatpush.bf16.msra.mxu3 %v2986_v13  ;;  %v2950_v22 = vor.u32 %v4296_v20, %v2949_v19  ;;  %v2989_v25 = vld [vmem:[%s5189_s1 + $0x50] sm:$0xf]  ;;  %v2954_v26 = vor.u32 %v4292_v21, %v2951_v23  ;;  %v4816_v27 = vpack.c.bf16 %v73_v24, %v73_v24  ;;  %v4301_v29 = vld [vmem:[%s5189_s1 + $0x54] sm:$0xf]  ;;  %v3125_v37 = vld [vmem:[#allocation3 + $0xe0] sm:$0xf] }
  0x14   :  { %v4305_v28 = vld [vmem:[%s5189_s1 + $0x6c] sm:$0xf0]  ;;  %v2991_v30 = vld [vmem:[%s5189_s1 + $0x70] sm:$0xf0]  ;;  %v3253_v40 = vld [vmem:[#allocation3 + $0x1e0] sm:$0xf] }
  0x15   :  { %200 = vmatpush.bf16.msra.mxu0 %v2942_v17  ;;  %v2990_v31 = vor.u32 %v4305_v28, %v2989_v25  ;;  %v2994_v32 = vor.u32 %v4301_v29, %v2991_v30  ;;  %v2957_v33 = vld [vmem:[%s5189_s1 + $0x10] sm:$0xf]  ;;  %v4293_v35 = vld [vmem:[%s5189_s1 + $0x14] sm:$0xf]  ;;  %213 = vmatpush.bf16.msra.mxu1 %v2946_v18  ;;  %v2997_v42 = vld [vmem:[%s5189_s1 + $0x58] sm:$0xf] }
  0x16   :  { %v4297_v34 = vld [vmem:[%s5189_s1 + $0x2c] sm:$0xf0]  ;;  %226 = vmatpush.bf16.msra.mxu2 %v2950_v22  ;;  %v2959_v36 = vld [vmem:[%s5189_s1 + $0x30] sm:$0xf0]  ;;  %v4306_v45 = vld [vmem:[%s5189_s1 + $0x74] sm:$0xf0] }
  0x17   :  { %v4337_v38 = vld [vmem:[#allocation3 + $0xec] sm:$0xf0]  ;;  %239 = vmatpush.bf16.msra.mxu3 %v2954_v26  ;;  %v2958_v39 = vor.u32 %v4297_v34, %v2957_v33  ;;  %v2962_v43 = vor.u32 %v4293_v35, %v2959_v36  ;;  %v4302_v46 = vld [vmem:[%s5189_s1 + $0x5c] sm:$0xf]  ;;  %v2998_v49 = vor.u32 %v4306_v45, %v2997_v42  ;;  %v3109_v51 = vld [vmem:[#allocation3 + $0xc0] sm:$0xf] }
  0x18   :  { %v4369_v41 = vld [vmem:[#allocation3 + $0x1ec] sm:$0xf0]  ;;  %3003 = vmatmul.msk.bf16.vlgmr.msra.gmra.mxu0 %vm189_vm0, %v4816_v27  ;;  %v3126_v44 = vor.u32 %v4337_v38, %v3125_v37  ;;  %v2999_v47 = vld [vmem:[%s5189_s1 + $0x78] sm:$0xf0]  ;;  %3004 = vmatmul.msk.bf16.vlgmr.msra.gmra.mxu1 %vm189_vm0, %v4816_v27  ;;  %v3237_v53 = vld [vmem:[#allocation3 + $0x1c0] sm:$0xf] }
  0x19   :  { %251 = vmatpush.bf16.msrb.mxu0 %v2990_v31  ;;  %264 = vmatpush.bf16.msrb.mxu1 %v2994_v32  ;;  %v3254_v48 = vor.u32 %v4369_v41, %v3253_v40  ;;  %v3002_v50 = vor.u32 %v4302_v46, %v2999_v47  ;;  %v4333_v52 = vld [vmem:[#allocation3 + $0xcc] sm:$0xf0]  ;;  %v2965_v55 = vld [vmem:[%s5189_s1 + $0x18] sm:$0xf]  ;;  %v4294_v58 = vld [vmem:[%s5189_s1 + $0x1c] sm:$0xf] }
  0x1a   :  { %3005 = vmatmul.msk.bf16.vlgmr.msra.gmra.mxu2 %vm189_vm0, %v4816_v27  ;;  %3006 = vmatmul.msk.bf16.vlgmr.msra.gmra.mxu3 %vm189_vm0, %v4816_v27  ;;  %v4365_v54 = vld [vmem:[#allocation3 + $0x1cc] sm:$0xf0]  ;;  %v4298_v56 = vld [vmem:[%s5189_s1 + $0x34] sm:$0xf0]  ;;  %v2967_v59 = vld [vmem:[%s5189_s1 + $0x38] sm:$0xf0]  ;;  %v3110_v61 = vor.u32 %v4333_v52, %v3109_v51 }
  0x1b   :  { %277 = vmatpush.bf16.msrb.mxu2 %v2998_v49  ;;  %v2966_v57 = vor.u32 %v4298_v56, %v2965_v55  ;;  %v3381_v60 = vld [vmem:[#allocation3 + $0x2e0] sm:$0xf]  ;;  %v4401_v62 = vld [vmem:[#allocation3 + $0x2ec] sm:$0xf0]  ;;  %290 = vmatpush.bf16.msrb.mxu3 %v3002_v50  ;;  %v3238_v1 = vor.u32 %v4365_v54, %v3237_v53  ;;  %v2970_v2 = vor.u32 %v4294_v58, %v2967_v59  ;;  %vm2931_vm1 = vcmask 64512  }
  0x1c   :  { %v3509_v63 = vld [vmem:[#allocation3 + $0x3e0] sm:$0xf]  ;;  %v4433_v0 = vld [vmem:[#allocation3 + $0x3ec] sm:$0xf0]  ;;  %v3382_v3 = vor.u32 %v4401_v62, %v3381_v60 }
  0x1d   :  { %252 = vmatpush.bf16.msrb.mxu0 %v2958_v39  ;;  %265 = vmatpush.bf16.msrb.mxu1 %v2962_v43  ;;  %v3093_v4 = vld [vmem:[#allocation3 + $0xa0] sm:$0xf]  ;;  %v4329_v5 = vld [vmem:[#allocation3 + $0xac] sm:$0xf0]  ;;  %v3510_v7 = vor.u32 %v4433_v0, %v3509_v63 }
  0x1e   :  { %v3221_v6 = vld [vmem:[#allocation3 + $0x1a0] sm:$0xf]  ;;  %v4361_v8 = vld [vmem:[#allocation3 + $0x1ac] sm:$0xf0]  ;;  %v3094_v13 = vor.u32 %v4329_v5, %v3093_v4 }
  0x1f   :  { %v3365_v9 = vld [vmem:[#allocation3 + $0x2c0] sm:$0xf]  ;;  %v4397_v10 = vld [vmem:[#allocation3 + $0x2cc] sm:$0xf0]  ;;  %278 = vmatpush.bf16.msrb.mxu2 %v2966_v57  ;;  %291 = vmatpush.bf16.msrb.mxu3 %v2970_v2  ;;  %v3222_v16 = vor.u32 %v4361_v8, %v3221_v6  ;;  %v3127_v8 = vld [vmem:[#allocation3 + $0xf0] sm:$0xf0] }
  0x20   :  { %v3493_v11 = vld [vmem:[#allocation3 + $0x3c0] sm:$0xf]  ;;  %v4429_v12 = vld [vmem:[#allocation3 + $0x3cc] sm:$0xf0]  ;;  %v3366_v14 = vor.u32 %v4397_v10, %v3365_v9  ;;  %v4367_v9 = vld [vmem:[#allocation3 + $0x1e4] sm:$0xf] }
  0x21   :  { %1087 = vmatpush.bf16.msra.mxu0 %v3126_v44  ;;  %1100 = vmatpush.bf16.msra.mxu1 %v3254_v48  ;;  %v3077_v15 = vld [vmem:[#allocation3 + $0x80] sm:$0xf]  ;;  %v4325_v17 = vld [vmem:[#allocation3 + $0x8c] sm:$0xf0]  ;;  %v3494_v20 = vor.u32 %v4429_v12, %v3493_v11  ;;  %v3255_v10 = vld [vmem:[#allocation3 + $0x1f0] sm:$0xf0] }
  0x22   :  { %v3349_v18 = vld [vmem:[#allocation3 + $0x2a0] sm:$0xf]  ;;  %v4393_v19 = vld [vmem:[#allocation3 + $0x2ac] sm:$0xf0]  ;;  %v3078_v25 = vor.u32 %v4325_v17, %v3077_v15  ;;  %v4331_v15 = vld [vmem:[#allocation3 + $0xc4] sm:$0xf] }
  0x23   :  { %1113 = vmatpush.bf16.msra.mxu2 %v3382_v3  ;;  %1126 = vmatpush.bf16.msra.mxu3 %v3510_v7  ;;  %v3205_v21 = vld [vmem:[#allocation3 + $0x180] sm:$0xf]  ;;  %v4357_v22 = vld [vmem:[#allocation3 + $0x18c] sm:$0xf0]  ;;  %v3350_v26 = vor.u32 %v4393_v19, %v3349_v18  ;;  %v4335_v7 = vld [vmem:[#allocation3 + $0xe4] sm:$0xf] }
  0x24   :  { %v3477_v23 = vld [vmem:[#allocation3 + $0x3a0] sm:$0xf]  ;;  %v4425_v24 = vld [vmem:[#allocation3 + $0x3ac] sm:$0xf0]  ;;  %v3206_v29 = vor.u32 %v4357_v22, %v3205_v21  ;;  %v3130_v17 = vor.u32 %v4335_v7, %v3127_v8  ;;  %v3111_v18 = vld [vmem:[#allocation3 + $0xd0] sm:$0xf0]  ;;  %v3258_v21 = vor.u32 %v4367_v9, %v3255_v10 }
  0x25   :  { %1088 = vmatpush.bf16.msra.mxu0 %v3110_v61  ;;  %1101 = vmatpush.bf16.msra.mxu1 %v3238_v1  ;;  %v3061_v28 = vld [vmem:[#allocation3 + $0x60] sm:$0xf]  ;;  %v4321_v30 = vld [vmem:[#allocation3 + $0x6c] sm:$0xf0]  ;;  %v3478_v33 = vor.u32 %v4425_v24, %v3477_v23  ;;  %v4363_v23 = vld [vmem:[#allocation3 + $0x1c4] sm:$0xf] }
  0x26   :  { %v3333_v31 = vld [vmem:[#allocation3 + $0x280] sm:$0xf]  ;;  %v4389_v32 = vld [vmem:[#allocation3 + $0x28c] sm:$0xf0]  ;;  %v3062_v38 = vor.u32 %v4321_v30, %v3061_v28  ;;  %v4399_v24 = vld [vmem:[#allocation3 + $0x2e4] sm:$0xf] }
  0x27   :  { %1114 = vmatpush.bf16.msra.mxu2 %v3366_v14  ;;  %1127 = vmatpush.bf16.msra.mxu3 %v3494_v20  ;;  %v3189_v34 = vld [vmem:[#allocation3 + $0x160] sm:$0xf]  ;;  %v4353_v35 = vld [vmem:[#allocation3 + $0x16c] sm:$0xf0]  ;;  %v3334_v39 = vor.u32 %v4389_v32, %v3333_v31  ;;  %v4431_v31 = vld [vmem:[#allocation3 + $0x3e4] sm:$0xf] }
  0x28   :  { %v3461_v36 = vld [vmem:[#allocation3 + $0x380] sm:$0xf]  ;;  %v4421_v37 = vld [vmem:[#allocation3 + $0x38c] sm:$0xf0]  ;;  %v3190_v41 = vor.u32 %v4353_v35, %v3189_v34  ;;  %3007 = vmatmul.msk.bf16.vlgmr.msrb.gmra.mxu0 %vm189_vm0, %v4816_v27  ;;  %3008 = vmatmul.msk.bf16.vlgmr.msrb.gmra.mxu1 %vm189_vm0, %v4816_v27  ;;  %v3511_v32 = vld [vmem:[#allocation3 + $0x3f0] sm:$0xf0] }
  0x29   :  { %1089 = vmatpush.bf16.msra.mxu0 %v3094_v13  ;;  %1102 = vmatpush.bf16.msra.mxu1 %v3222_v16  ;;  %v3045_v40 = vld [vmem:[#allocation3 + $0x40] sm:$0xf]  ;;  %v4317_v42 = vld [vmem:[#allocation3 + $0x4c] sm:$0xf0]  ;;  %v3462_v45 = vor.u32 %v4421_v37, %v3461_v36  ;;  %v4327_v35 = vld [vmem:[#allocation3 + $0xa4] sm:$0xf] }
  0x2a   :  { %v3317_v43 = vld [vmem:[#allocation3 + $0x260] sm:$0xf]  ;;  %v4385_v44 = vld [vmem:[#allocation3 + $0x26c] sm:$0xf0]  ;;  %3009 = vmatmul.msk.bf16.vlgmr.msrb.gmra.mxu2 %vm189_vm0, %v4816_v27  ;;  %3010 = vmatmul.msk.bf16.vlgmr.msrb.gmra.mxu3 %vm189_vm0, %v4816_v27  ;;  %v3046_v50 = vor.u32 %v4317_v42, %v3045_v40  ;;  %v3367_v40 = vld [vmem:[#allocation3 + $0x2d0] sm:$0xf0] }
  0x2b   :  { %1115 = vmatpush.bf16.msra.mxu2 %v3350_v26  ;;  %1128 = vmatpush.bf16.msra.mxu3 %v3478_v33  ;;  %v3173_v46 = vld [vmem:[#allocation3 + $0x140] sm:$0xf]  ;;  %v4349_v47 = vld [vmem:[#allocation3 + $0x14c] sm:$0xf0]  ;;  %v3318_v51 = vor.u32 %v4385_v44, %v3317_v43  ;;  %v3239_v26 = vld [vmem:[#allocation3 + $0x1d0] sm:$0xf0]  ;;  %v3114_v33 = vor.u32 %v4331_v15, %v3111_v18 }
  0x2c   :  { %v3445_v48 = vld [vmem:[#allocation3 + $0x360] sm:$0xf]  ;;  %v4417_v49 = vld [vmem:[#allocation3 + $0x36c] sm:$0xf0]  ;;  %v3174_v53 = vor.u32 %v4349_v47, %v3173_v46  ;;  %v3242_v36 = vor.u32 %v4363_v23, %v3239_v26  ;;  %v4359_v42 = vld [vmem:[#allocation3 + $0x1a4] sm:$0xf] }
  0x2d   :  { %1090 = vmatpush.bf16.msra.mxu0 %v3078_v25  ;;  %1103 = vmatpush.bf16.msra.mxu1 %v3206_v29  ;;  %v3029_v52 = vld [vmem:[#allocation3 + $0x20] sm:$0xf]  ;;  %v4313_v54 = vld [vmem:[#allocation3 + $0x2c] sm:$0xf0]  ;;  %v3446_v57 = vor.u32 %v4417_v49, %v3445_v48  ;;  %v3383_v25 = vld [vmem:[#allocation3 + $0x2f0] sm:$0xf0] }
  0x2e   :  { %v3301_v55 = vld [vmem:[#allocation3 + $0x240] sm:$0xf]  ;;  %v4381_v56 = vld [vmem:[#allocation3 + $0x24c] sm:$0xf0]  ;;  %v3030_v62 = vor.u32 %v4313_v54, %v3029_v52  ;;  %v3386_v34 = vor.u32 %v4399_v24, %v3383_v25  ;;  %v3223_v43 = vld [vmem:[#allocation3 + $0x1b0] sm:$0xf0] }
  0x2f   :  { %1116 = vmatpush.bf16.msra.mxu2 %v3334_v39  ;;  %1129 = vmatpush.bf16.msra.mxu3 %v3462_v45  ;;  %v3157_v58 = vld [vmem:[#allocation3 + $0x120] sm:$0xf]  ;;  %v4345_v59 = vld [vmem:[#allocation3 + $0x12c] sm:$0xf0]  ;;  %v3302_v27 = vor.u32 %v4381_v56, %v3301_v55  ;;  %v4395_v39 = vld [vmem:[#allocation3 + $0x2c4] sm:$0xf]  ;;  %v3226_v49 = vor.u32 %v4359_v42, %v3223_v43 }
  0x30   :  { %v3429_v60 = vld [vmem:[#allocation3 + $0x340] sm:$0xf]  ;;  %v4413_v61 = vld [vmem:[#allocation3 + $0x34c] sm:$0xf0]  ;;  %v3158_v2 = vor.u32 %v4345_v59, %v3157_v58  ;;  %v4427_v44 = vld [vmem:[#allocation3 + $0x3c4] sm:$0xf]  ;;  %v3370_v47 = vor.u32 %v4395_v39, %v3367_v40 }
  0x31   :  { %1091 = vmatpush.bf16.msra.mxu0 %v3062_v38  ;;  %1104 = vmatpush.bf16.msra.mxu1 %v3190_v41  ;;  %v3013_v63 = vld [vmem:[#allocation3] sm:$0xf]  ;;  %v4309_v0 = vld [vmem:[#allocation3 + $0xc] sm:$0xf0]  ;;  %v3430_v6 = vor.u32 %v4413_v61, %v3429_v60  ;;  %v3095_v38 = vld [vmem:[#allocation3 + $0xb0] sm:$0xf0]  ;;  %v3514_v41 = vor.u32 %v4431_v31, %v3511_v32 }
  0x32   :  { %v3141_v1 = vld [vmem:[#allocation3 + $0x100] sm:$0xf]  ;;  %v4341_v3 = vld [vmem:[#allocation3 + $0x10c] sm:$0xf0]  ;;  %v3014_v13 = vor.u32 %v4309_v0, %v3013_v63  ;;  %v3495_v45 = vld [vmem:[#allocation3 + $0x3d0] sm:$0xf0]  ;;  %v3098_v46 = vor.u32 %v4327_v35, %v3095_v38 }
  0x33   :  { %1117 = vmatpush.bf16.msra.mxu2 %v3318_v51  ;;  %v3285_v4 = vld [vmem:[#allocation3 + $0x220] sm:$0xf]  ;;  %v4377_v5 = vld [vmem:[#allocation3 + $0x22c] sm:$0xf0]  ;;  %1130 = vmatpush.bf16.msra.mxu3 %v3446_v57  ;;  %v3142_v16 = vor.u32 %v4341_v3, %v3141_v1  ;;  %v4323_v48 = vld [vmem:[#allocation3 + $0x84] sm:$0xf] }
  0x34   :  { %v3413_v11 = vld [vmem:[#allocation3 + $0x320] sm:$0xf]  ;;  %v4409_v12 = vld [vmem:[#allocation3 + $0x32c] sm:$0xf0]  ;;  %v3286_v14 = vor.u32 %v4377_v5, %v3285_v4  ;;  %v4391_v51 = vld [vmem:[#allocation3 + $0x2a4] sm:$0xf] }
  0x35   :  { %1092 = vmatpush.bf16.msra.mxu0 %v3046_v50  ;;  %1105 = vmatpush.bf16.msra.mxu1 %v3174_v53  ;;  %v3269_v19 = vld [vmem:[#allocation3 + $0x200] sm:$0xf]  ;;  %v4373_v20 = vld [vmem:[#allocation3 + $0x20c] sm:$0xf0]  ;;  %v3414_v22 = vor.u32 %v4409_v12, %v3413_v11  ;;  %v3079_v50 = vld [vmem:[#allocation3 + $0x90] sm:$0xf0]  ;;  %v3498_v53 = vor.u32 %v4427_v44, %v3495_v45 }
  0x36   :  { %v3397_v28 = vld [vmem:[#allocation3 + $0x300] sm:$0xf]  ;;  %v4405_v29 = vld [vmem:[#allocation3 + $0x30c] sm:$0xf0]  ;;  %v3270_v30 = vor.u32 %v4373_v20, %v3269_v19  ;;  %v3351_v52 = vld [vmem:[#allocation3 + $0x2b0] sm:$0xf0]  ;;  %v3082_v58 = vor.u32 %v4323_v48, %v3079_v50 }
  0x37   :  { %1118 = vmatpush.bf16.msra.mxu2 %v3302_v27  ;;  %1131 = vmatpush.bf16.msra.mxu3 %v3430_v6  ;;  %v3398_v37 = vor.u32 %v4405_v29, %v3397_v28  ;;  %v4355_v54 = vld [vmem:[#allocation3 + $0x184] sm:$0xf]  ;;  %v3207_v55 = vld [vmem:[#allocation3 + $0x190] sm:$0xf0]  ;;  %v3354_v59 = vor.u32 %v4391_v51, %v3351_v52 }
  0x38   :  { %v4423_v56 = vld [vmem:[#allocation3 + $0x3a4] sm:$0xf]  ;;  %v3479_v57 = vld [vmem:[#allocation3 + $0x3b0] sm:$0xf0]  ;;  %v3210_v61 = vor.u32 %v4355_v54, %v3207_v55 }
  0x39   :  { %1093 = vmatpush.bf16.msra.mxu0 %v3030_v62  ;;  %1106 = vmatpush.bf16.msra.mxu1 %v3158_v2  ;;  %v4319_v60 = vld [vmem:[#allocation3 + $0x64] sm:$0xf]  ;;  %v3063_v62 = vld [vmem:[#allocation3 + $0x70] sm:$0xf0]  ;;  %v3482_v0 = vor.u32 %v4423_v56, %v3479_v57 }
  0x3a   :  { %v4387_v27 = vld [vmem:[#allocation3 + $0x284] sm:$0xf]  ;;  %v3335_v63 = vld [vmem:[#allocation3 + $0x290] sm:$0xf0]  ;;  %v3066_v5 = vor.u32 %v4319_v60, %v3063_v62  ;;  %v4370_v62 = vld [vmem:[#allocation3 + $0x1f4] sm:$0xf0] }
  0x3b   :  { %1119 = vmatpush.bf16.msra.mxu2 %v3286_v14  ;;  %1132 = vmatpush.bf16.msra.mxu3 %v3414_v22  ;;  %v4351_v1 = vld [vmem:[#allocation3 + $0x164] sm:$0xf]  ;;  %v3191_v2 = vld [vmem:[#allocation3 + $0x170] sm:$0xf0]  ;;  %v3338_v6 = vor.u32 %v4387_v27, %v3335_v63 }
  0x3c   :  { %v4419_v3 = vld [vmem:[#allocation3 + $0x384] sm:$0xf]  ;;  %v3463_v4 = vld [vmem:[#allocation3 + $0x390] sm:$0xf0]  ;;  %v3194_v7 = vor.u32 %v4351_v1, %v3191_v2 }
  0x3d   :  { %1094 = vmatpush.bf16.msra.mxu0 %v3014_v13  ;;  %1107 = vmatpush.bf16.msra.mxu1 %v3142_v16  ;;  %v4315_v8 = vld [vmem:[#allocation3 + $0x44] sm:$0xf]  ;;  %v3047_v9 = vld [vmem:[#allocation3 + $0x50] sm:$0xf0]  ;;  %v3466_v10 = vor.u32 %v4419_v3, %v3463_v4 }
  0x3e   :  { %v4347_v11 = vld [vmem:[#allocation3 + $0x144] sm:$0xf]  ;;  %v3175_v12 = vld [vmem:[#allocation3 + $0x150] sm:$0xf0]  ;;  %v3050_v13 = vor.u32 %v4315_v8, %v3047_v9  ;;  %v3245_v8 = vld [vmem:[#allocation3 + $0x1c8] sm:$0xf] }
  0x3f   :  { %1120 = vmatpush.bf16.msra.mxu2 %v3270_v30  ;;  %1133 = vmatpush.bf16.msra.mxu3 %v3398_v37  ;;  %v3178_v14 = vor.u32 %v4347_v11, %v3175_v12  ;;  %v4383_v15 = vld [vmem:[#allocation3 + $0x264] sm:$0xf]  ;;  %v3319_v16 = vld [vmem:[#allocation3 + $0x270] sm:$0xf0]  ;;  %v4366_v9 = vld [vmem:[#allocation3 + $0x1d4] sm:$0xf0] }
  0x40   :  { %v3322_v18 = vor.u32 %v4383_v15, %v3319_v16  ;;  %v3447_v19 = vld [vmem:[#allocation3 + $0x370] sm:$0xf0]  ;;  %v4343_v24 = vld [vmem:[#allocation3 + $0x124] sm:$0xf]  ;;  %v3389_v15 = vld [vmem:[#allocation3 + $0x2e8] sm:$0xf] }
  0x41   :  { %1139 = vmatpush.bf16.msrb.mxu0 %v3130_v17  ;;  %1152 = vmatpush.bf16.msrb.mxu1 %v3258_v21  ;;  %v4415_v17 = vld [vmem:[#allocation3 + $0x364] sm:$0xf]  ;;  %v3031_v22 = vld [vmem:[#allocation3 + $0x30] sm:$0xf0]  ;;  %v4402_v16 = vld [vmem:[#allocation3 + $0x2f4] sm:$0xf0] }
  0x42   :  { %v3450_v20 = vor.u32 %v4415_v17, %v3447_v19  ;;  %v4311_v21 = vld [vmem:[#allocation3 + $0x24] sm:$0xf]  ;;  %v3159_v25 = vld [vmem:[#allocation3 + $0x130] sm:$0xf0]  ;;  %v3517_v17 = vld [vmem:[#allocation3 + $0x3e8] sm:$0xf] }
  0x43   :  { %1165 = vmatpush.bf16.msrb.mxu2 %v3386_v34  ;;  %1178 = vmatpush.bf16.msrb.mxu3 %v3514_v41  ;;  %v3034_v23 = vor.u32 %v4311_v21, %v3031_v22  ;;  %v3162_v26 = vor.u32 %v4343_v24, %v3159_v25  ;;  %v4379_v28 = vld [vmem:[#allocation3 + $0x244] sm:$0xf]  ;;  %v3303_v29 = vld [vmem:[#allocation3 + $0x250] sm:$0xf0]  ;;  %v4434_v21 = vld [vmem:[#allocation3 + $0x3f4] sm:$0xf0] }
  0x44   :  { %v4411_v30 = vld [vmem:[#allocation3 + $0x344] sm:$0xf]  ;;  %v3306_v31 = vor.u32 %v4379_v28, %v3303_v29  ;;  %v3431_v32 = vld [vmem:[#allocation3 + $0x350] sm:$0xf0]  ;;  %v3101_v22 = vld [vmem:[#allocation3 + $0xa8] sm:$0xf]  ;;  %v3390_v29 = vor.u32 %v4402_v16, %v3389_v15 }
  0x45   :  { %1140 = vmatpush.bf16.msrb.mxu0 %v3114_v33  ;;  %1153 = vmatpush.bf16.msrb.mxu1 %v3242_v36  ;;  %v3434_v33 = vor.u32 %v4411_v30, %v3431_v32  ;;  %v4307_v34 = vld [vmem:[#allocation3 + $0x4] sm:$0xf]  ;;  %v3015_v35 = vld [vmem:[#allocation3 + $0x10] sm:$0xf0]  ;;  %v3229_v25 = vld [vmem:[#allocation3 + $0x1a8] sm:$0xf] }
  0x46   :  { %v4339_v36 = vld [vmem:[#allocation3 + $0x104] sm:$0xf]  ;;  %v3018_v37 = vor.u32 %v4307_v34, %v3015_v35  ;;  %v3143_v38 = vld [vmem:[#allocation3 + $0x110] sm:$0xf0]  ;;  %v4398_v34 = vld [vmem:[#allocation3 + $0x2d4] sm:$0xf0] }
  0x47   :  { %1166 = vmatpush.bf16.msrb.mxu2 %v3370_v47  ;;  %1179 = vmatpush.bf16.msrb.mxu3 %v3498_v53  ;;  %v3146_v39 = vor.u32 %v4339_v36, %v3143_v38  ;;  %v4375_v40 = vld [vmem:[#allocation3 + $0x224] sm:$0xf]  ;;  %v3287_v41 = vld [vmem:[#allocation3 + $0x230] sm:$0xf0]  ;;  %v3501_v35 = vld [vmem:[#allocation3 + $0x3c8] sm:$0xf] }
  0x48   :  { %v3290_v42 = vor.u32 %v4375_v40, %v3287_v41  ;;  %v4407_v43 = vld [vmem:[#allocation3 + $0x324] sm:$0xf]  ;;  %v3415_v44 = vld [vmem:[#allocation3 + $0x330] sm:$0xf0]  ;;  %v4430_v38 = vld [vmem:[#allocation3 + $0x3d4] sm:$0xf0] }
  0x49   :  { %1141 = vmatpush.bf16.msrb.mxu0 %v3098_v46  ;;  %1154 = vmatpush.bf16.msrb.mxu1 %v3226_v49  ;;  %v3418_v45 = vor.u32 %v4407_v43, %v3415_v44  ;;  %v4371_v46 = vld [vmem:[#allocation3 + $0x204] sm:$0xf]  ;;  %v3271_v47 = vld [vmem:[#allocation3 + $0x210] sm:$0xf0]  ;;  %v4326_v40 = vld [vmem:[#allocation3 + $0x94] sm:$0xf0] }
  0x4a   :  { %v3274_v48 = vor.u32 %v4371_v46, %v3271_v47  ;;  %v4403_v49 = vld [vmem:[#allocation3 + $0x304] sm:$0xf]  ;;  %v3399_v50 = vld [vmem:[#allocation3 + $0x310] sm:$0xf0]  ;;  %v3213_v41 = vld [vmem:[#allocation3 + $0x188] sm:$0xf]  ;;  %v3502_v46 = vor.u32 %v4430_v38, %v3501_v35 }
  0x4b   :  { %1167 = vmatpush.bf16.msrb.mxu2 %v3354_v59  ;;  %1180 = vmatpush.bf16.msrb.mxu3 %v3482_v0  ;;  %v3402_v51 = vor.u32 %v4403_v49, %v3399_v50  ;;  %v4882_v52 = vld [vmem:[%s5190_s2] sm:$0xff]  ;;  %v4338_v59 = vld [vmem:[#allocation3 + $0xf4] sm:$0xf0]  ;;  %v3037_v15 = vld [vmem:[#allocation3 + $0x28] sm:$0xf] }
  0x4c   :  { %v93_v53 = vperm.slane %v4882_v52, 0  ;;  %v94_v54 = vperm.slane %v4882_v52, 1  ;;  %v95_v0 = vperm.slane %v4882_v52, 2  ;;  %v96_v3 = vperm.slane %v4882_v52, 3  ;;  %v4394_v49 = vld [vmem:[#allocation3 + $0x2b4] sm:$0xf0] }
  0x4d   :  { %1142 = vmatpush.bf16.msrb.mxu0 %v3082_v58  ;;  %1155 = vmatpush.bf16.msrb.mxu1 %v3210_v61  ;;  %v3133_v58 = vld [vmem:[#allocation3 + $0xe8] sm:$0xf]  ;;  %v4314_v16 = vld [vmem:[#allocation3 + $0x34] sm:$0xf0]  ;;  %v3135_v35 = vld [vmem:[#allocation3 + $0xf8] sm:$0xf0] }
  0x4e   :  { %v3261_v61 = vld [vmem:[#allocation3 + $0x1e8] sm:$0xf]  ;;  %v3134_v1 = vor.u32 %v4338_v59, %v3133_v58  ;;  %v3263_v38 = vld [vmem:[#allocation3 + $0x1f8] sm:$0xf0] }
  0x4f   :  { %1168 = vmatpush.bf16.msrb.mxu2 %v3338_v6  ;;  %1181 = vmatpush.bf16.msrb.mxu3 %v3466_v10  ;;  %v3262_v4 = vor.u32 %v4370_v62, %v3261_v61  ;;  %v4334_v6 = vld [vmem:[#allocation3 + $0xd4] sm:$0xf0] }
  0x50   :  { %v4390_v61 = vld [vmem:[#allocation3 + $0x294] sm:$0xf0] }
  0x51   :  { %1143 = vmatpush.bf16.msrb.mxu0 %v3066_v5  ;;  %1156 = vmatpush.bf16.msrb.mxu1 %v3194_v7  ;;  %v3117_v5 = vld [vmem:[#allocation3 + $0xc8] sm:$0xf] }
  0x53   :  { %1169 = vmatpush.bf16.msrb.mxu2 %v3322_v18  ;;  %1182 = vmatpush.bf16.msrb.mxu3 %v3450_v20  ;;  %v3246_v20 = vor.u32 %v4366_v9, %v3245_v8  ;;  %v3325_v9 = vld [vmem:[#allocation3 + $0x268] sm:$0xf] }
  0x55   :  { %1144 = vmatpush.bf16.msrb.mxu0 %v3050_v13  ;;  %1157 = vmatpush.bf16.msrb.mxu1 %v3178_v14  ;;  %v3118_v14 = vor.u32 %v4334_v6, %v3117_v5  ;;  %v4350_v5 = vld [vmem:[#allocation3 + $0x154] sm:$0xf0] }
  0x57   :  { %1170 = vmatpush.bf16.msrb.mxu2 %v3306_v31  ;;  %1183 = vmatpush.bf16.msrb.mxu3 %v3434_v33  ;;  %v3518_v31 = vor.u32 %v4434_v21, %v3517_v17  ;;  %v3373_v33 = vld [vmem:[#allocation3 + $0x2c8] sm:$0xf] }
  0x58   :  { %v3374_v44 = vor.u32 %v4398_v34, %v3373_v33  ;;  %v3165_v17 = vld [vmem:[#allocation3 + $0x128] sm:$0xf]  ;;  %v4336_v33 = vld [vmem:[#allocation3 + $0xec] sm:$0xf] }
  0x59   :  { %1145 = vmatpush.bf16.msrb.mxu0 %v3034_v23  ;;  %1158 = vmatpush.bf16.msrb.mxu1 %v3162_v26  ;;  %v4330_v23 = vld [vmem:[#allocation3 + $0xb4] sm:$0xf0]  ;;  %v3309_v21 = vld [vmem:[#allocation3 + $0x248] sm:$0xf] }
  0x5a   :  { %v4362_v26 = vld [vmem:[#allocation3 + $0x1b4] sm:$0xf0]  ;;  %v3102_v32 = vor.u32 %v4330_v23, %v3101_v22  ;;  %v3437_v23 = vld [vmem:[#allocation3 + $0x348] sm:$0xf] }
  0x5b   :  { %1171 = vmatpush.bf16.msrb.mxu2 %v3290_v42  ;;  %1184 = vmatpush.bf16.msrb.mxu3 %v3418_v45  ;;  %v4358_v42 = vld [vmem:[#allocation3 + $0x194] sm:$0xf0] }
  0x5c   :  { %v3214_v50 = vor.u32 %v4358_v42, %v3213_v41  ;;  %v4382_v22 = vld [vmem:[#allocation3 + $0x254] sm:$0xf0] }
  0x5d   :  { %1146 = vmatpush.bf16.msrb.mxu0 %v3018_v37  ;;  %1159 = vmatpush.bf16.msrb.mxu1 %v3146_v39  ;;  %v3230_v37 = vor.u32 %v4362_v26, %v3229_v25  ;;  %v3085_v39 = vld [vmem:[#allocation3 + $0x88] sm:$0xf]  ;;  %v4414_v26 = vld [vmem:[#allocation3 + $0x354] sm:$0xf0]  ;;  %v3310_v34 = vor.u32 %v4382_v22, %v3309_v21 }
  0x5e   :  { %v3086_v47 = vor.u32 %v4326_v40, %v3085_v39  ;;  %v3438_v39 = vor.u32 %v4414_v26, %v3437_v23  ;;  %v3293_v40 = vld [vmem:[#allocation3 + $0x228] sm:$0xf]  ;;  %v4378_v41 = vld [vmem:[#allocation3 + $0x234] sm:$0xf0] }
  0x5f   :  { %1172 = vmatpush.bf16.msrb.mxu2 %v3274_v48  ;;  %1185 = vmatpush.bf16.msrb.mxu3 %v3402_v51  ;;  %v3357_v48 = vld [vmem:[#allocation3 + $0x2a8] sm:$0xf] }
  0x60   :  { %v3485_v51 = vld [vmem:[#allocation3 + $0x3a8] sm:$0xf]  ;;  %v3358_v58 = vor.u32 %v4394_v49, %v3357_v48  ;;  %v4332_v48 = vld [vmem:[#allocation3 + $0xcc] sm:$0xf]  ;;  %v3294_v49 = vor.u32 %v4378_v41, %v3293_v40 }
  0x61   :  { %v4388_v41 = vld [vmem:[#allocation3 + $0x28c] sm:$0xf] }
  0x95   :  { %v202_v55 = vpop.f32.mrf.mxu0  ;;  %v215_v57 = vpop.f32.mrf.mxu1 }
  0x96   :  { %v203_v56 = vadd.f32 %v202_v55, %v93_v53  ;;  %v216_v60 = vadd.f32 %v215_v57, %v94_v54  ;;  %v4426_v53 = vld [vmem:[#allocation3 + $0x3b4] sm:$0xf0]  ;;  %v3069_v54 = vld [vmem:[#allocation3 + $0x68] sm:$0xf] }
  0x97   :  { %v4322_v55 = vld [vmem:[#allocation3 + $0x74] sm:$0xf0]  ;;  %v3486_v59 = vor.u32 %v4426_v53, %v3485_v51  ;;  %v4364_v51 = vld [vmem:[#allocation3 + $0x1cc] sm:$0xf]  ;;  %v3247_v53 = vld [vmem:[#allocation3 + $0x1d8] sm:$0xf0] }
  0x98   :  { %v297_v27 = vmax.f32 %v203_v56, 0.0  ;;  %v298_v63 = vmax.f32 %v216_v60, 0.0  ;;  %v3197_v56 = vld [vmem:[#allocation3 + $0x168] sm:$0xf]  ;;  %v4354_v57 = vld [vmem:[#allocation3 + $0x174] sm:$0xf0]  ;;  %v3070_v62 = vor.u32 %v4322_v55, %v3069_v54 }
  0x99   :  { %v3341_v60 = vld [vmem:[#allocation3 + $0x288] sm:$0xf] }
  0x9a   :  { %v4887_v2 = vpack.c.bf16 %v297_v27, %v297_v27  ;;  %v4890_v7 = vpack.c.bf16 %v298_v63, %v298_v63  ;;  %v3198_v27 = vor.u32 %v4354_v57, %v3197_v56  ;;  %v3469_v63 = vld [vmem:[#allocation3 + $0x388] sm:$0xf]  ;;  %v3342_v6 = vor.u32 %v4390_v61, %v3341_v60  ;;  %v4374_v56 = vld [vmem:[#allocation3 + $0x214] sm:$0xf0]  ;;  %v3391_v60 = vld [vmem:[#allocation3 + $0x2f8] sm:$0xf0] }
  0x9b   :  { %v3277_v55 = vld [vmem:[#allocation3 + $0x208] sm:$0xf] }
  0x9c   :  { %1095 = vmatmul.bf16.vlgmr.msra.gmra.mxu0 %v4887_v2  ;;  %1108 = vmatmul.bf16.vlgmr.msra.gmra.mxu1 %v4890_v7  ;;  %v3405_v57 = vld [vmem:[#allocation3 + $0x308] sm:$0xf] }
  0x9d   :  { %v228_v10 = vpop.f32.mrf.mxu2  ;;  %v241_v12 = vpop.f32.mrf.mxu3  ;;  %1191 = vmatpush.bf16.msra.mxu0 %v3134_v1  ;;  %1204 = vmatpush.bf16.msra.mxu1 %v3262_v4  ;;  %v3053_v1 = vld [vmem:[#allocation3 + $0x48] sm:$0xf] }
  0x9e   :  { %v229_v11 = vadd.f32 %v228_v10, %v95_v0  ;;  %v204_v13 = vpop.f32.mrf.mxu0  ;;  %v242_v18 = vadd.f32 %v241_v12, %v96_v3  ;;  %v217_v19 = vpop.f32.mrf.mxu1  ;;  %v4422_v0 = vld [vmem:[#allocation3 + $0x394] sm:$0xf0]  ;;  %v3181_v4 = vld [vmem:[#allocation3 + $0x148] sm:$0xf] }
  0x9f   :  { %v4318_v3 = vld [vmem:[#allocation3 + $0x54] sm:$0xf0]  ;;  %v3470_v8 = vor.u32 %v4422_v0, %v3469_v63  ;;  %v3182_v12 = vor.u32 %v4350_v5, %v3181_v4  ;;  %v3453_v13 = vld [vmem:[#allocation3 + $0x368] sm:$0xf]  ;;  %v3519_v63 = vld [vmem:[#allocation3 + $0x3f8] sm:$0xf0] }
  0xa0   :  { %v299_v24 = vmax.f32 %v229_v11, 0.0  ;;  %v300_v28 = vmax.f32 %v242_v18, 0.0  ;;  %v4386_v10 = vld [vmem:[#allocation3 + $0x274] sm:$0xf0]  ;;  %v3054_v11 = vor.u32 %v4318_v3, %v3053_v1  ;;  %v4328_v0 = vld [vmem:[#allocation3 + $0xac] sm:$0xf]  ;;  %v3278_v1 = vor.u32 %v4374_v56, %v3277_v55 }
  0xa1   :  { %1192 = vmatpush.bf16.msra.mxu0 %v3118_v14  ;;  %1205 = vmatpush.bf16.msra.mxu1 %v3246_v20  ;;  %v4418_v14 = vld [vmem:[#allocation3 + $0x374] sm:$0xf0]  ;;  %v3326_v19 = vor.u32 %v4386_v10, %v3325_v9  ;;  %v3103_v3 = vld [vmem:[#allocation3 + $0xb8] sm:$0xf0]  ;;  %v4360_v4 = vld [vmem:[#allocation3 + $0x1ac] sm:$0xf] }
  0xa2   :  { %v4894_v30 = vpack.c.bf16 %v299_v24, %v299_v24  ;;  %v4896_v36 = vpack.c.bf16 %v300_v28, %v300_v28  ;;  %v4346_v18 = vld [vmem:[#allocation3 + $0x134] sm:$0xf0]  ;;  %v3454_v20 = vor.u32 %v4418_v14, %v3453_v13  ;;  %v3038_v24 = vor.u32 %v4314_v16, %v3037_v15  ;;  %v3021_v28 = vld [vmem:[#allocation3 + $0x8] sm:$0xf]  ;;  %v3231_v5 = vld [vmem:[#allocation3 + $0x1b8] sm:$0xf0] }
  0xa3   :  { %v3166_v25 = vor.u32 %v4346_v18, %v3165_v17  ;;  %v4396_v10 = vld [vmem:[#allocation3 + $0x2cc] sm:$0xf]  ;;  %v3234_v13 = vor.u32 %v4360_v4, %v3231_v5  ;;  %v3503_v15 = vld [vmem:[#allocation3 + $0x3d8] sm:$0xf0] }
  0xa4   :  { %1121 = vmatmul.bf16.vlgmr.msra.gmra.mxu2 %v4894_v30  ;;  %1134 = vmatmul.bf16.vlgmr.msra.gmra.mxu3 %v4896_v36  ;;  %v4428_v14 = vld [vmem:[#allocation3 + $0x3cc] sm:$0xf]  ;;  %v3087_v17 = vld [vmem:[#allocation3 + $0x98] sm:$0xf0] }
  0xa5   :  { %1217 = vmatpush.bf16.msra.mxu2 %v3390_v29  ;;  %v230_v43 = vpop.f32.mrf.mxu2  ;;  %1230 = vmatpush.bf16.msra.mxu3 %v3518_v31  ;;  %v243_v45 = vpop.f32.mrf.mxu3  ;;  %v4310_v29 = vld [vmem:[#allocation3 + $0x14] sm:$0xf0]  ;;  %v3149_v31 = vld [vmem:[#allocation3 + $0x108] sm:$0xf]  ;;  %v4324_v16 = vld [vmem:[#allocation3 + $0x8c] sm:$0xf]  ;;  %v3506_v23 = vor.u32 %v4428_v14, %v3503_v15 }
  0xa6   :  { %1193 = vmatpush.bf16.msra.mxu0 %v3102_v32  ;;  %1206 = vmatpush.bf16.msra.mxu1 %v3230_v37  ;;  %v4342_v32 = vld [vmem:[#allocation3 + $0x114] sm:$0xf0]  ;;  %v4368_v37 = vld [vmem:[#allocation3 + $0x1ec] sm:$0xf]  ;;  %v3022_v42 = vor.u32 %v4310_v29, %v3021_v28  ;;  %v4906_v21 = vpop.f32.mrf.mxu0  ;;  %v4908_v22 = vpop.f32.mrf.mxu1  ;;  %v3090_v28 = vor.u32 %v4324_v16, %v3087_v17  ;;  %v3023_v14 = vld [vmem:[#allocation3 + $0x18] sm:$0xf0] }
  0xa7   :  { %v3150_v43 = vor.u32 %v4342_v32, %v3149_v31  ;;  %v4410_v45 = vld [vmem:[#allocation3 + $0x334] sm:$0xf0]  ;;  %v4356_v18 = vld [vmem:[#allocation3 + $0x18c] sm:$0xf]  ;;  %v3487_v32 = vld [vmem:[#allocation3 + $0x3b8] sm:$0xf0] }
  0xa8   :  { %v4424_v31 = vld [vmem:[#allocation3 + $0x3ac] sm:$0xf]  ;;  %v3151_v16 = vld [vmem:[#allocation3 + $0x118] sm:$0xf0] }
  0xa9   :  { %1218 = vmatpush.bf16.msra.mxu2 %v3374_v44  ;;  %1231 = vmatpush.bf16.msra.mxu3 %v3502_v46  ;;  %v3421_v44 = vld [vmem:[#allocation3 + $0x328] sm:$0xf]  ;;  %v3138_v46 = vor.u32 %v4336_v33, %v3135_v35  ;;  %v4320_v33 = vld [vmem:[#allocation3 + $0x6c] sm:$0xf]  ;;  %v3490_v40 = vor.u32 %v4424_v31, %v3487_v32  ;;  %v4450_v31 = vld [vmem:[%s5193_s5 + $0x78] sm:$0xff] }
  0xaa   :  { %1194 = vmatpush.bf16.msra.mxu0 %v3086_v47  ;;  %1207 = vmatpush.bf16.msra.mxu1 %v3214_v50  ;;  %v3266_v47 = vor.u32 %v4368_v37, %v3263_v38  ;;  %v3119_v50 = vld [vmem:[#allocation3 + $0xd8] sm:$0xf0]  ;;  %v3422_v54 = vor.u32 %v4410_v45, %v3421_v44  ;;  %v4352_v35 = vld [vmem:[#allocation3 + $0x16c] sm:$0xf] }
  0xab   :  { %v3122_v61 = vor.u32 %v4332_v48, %v3119_v50  ;;  %v3199_v37 = vld [vmem:[#allocation3 + $0x178] sm:$0xf0]  ;;  %v4420_v45 = vld [vmem:[#allocation3 + $0x38c] sm:$0xf] }
  0xac   :  { %1147 = vmatmul.bf16.vlgmr.msrb.gmra.mxu0 %v4887_v2  ;;  %1160 = vmatmul.bf16.vlgmr.msrb.gmra.mxu1 %v4890_v7  ;;  %v3202_v44 = vor.u32 %v4352_v35, %v3199_v37  ;;  %v3055_v48 = vld [vmem:[#allocation3 + $0x58] sm:$0xf0]  ;;  %v4384_v56 = vld [vmem:[#allocation3 + $0x26c] sm:$0xf] }
  0xad   :  { %1219 = vmatpush.bf16.msra.mxu2 %v3358_v58  ;;  %1232 = vmatpush.bf16.msra.mxu3 %v3486_v59  ;;  %v4406_v58 = vld [vmem:[#allocation3 + $0x314] sm:$0xf0]  ;;  %v4400_v59 = vld [vmem:[#allocation3 + $0x2ec] sm:$0xf]  ;;  %v4910_v26 = vpop.f32.mrf.mxu2  ;;  %v4914_v38 = vpop.f32.mrf.mxu3  ;;  %v3183_v50 = vld [vmem:[#allocation3 + $0x158] sm:$0xf0] }
  0xae   :  { %1195 = vmatpush.bf16.msra.mxu0 %v3070_v62  ;;  %1208 = vmatpush.bf16.msra.mxu1 %v3198_v27  ;;  %v3250_v62 = vor.u32 %v4364_v51, %v3247_v53  ;;  %v4432_v27 = vld [vmem:[#allocation3 + $0x3ec] sm:$0xf]  ;;  %v256_v53 = vpop.f32.mrf.mxu0  ;;  %v3279_v35 = vld [vmem:[#allocation3 + $0x218] sm:$0xf0] }
  0xaf   :  { %v3522_v9 = vor.u32 %v4432_v27, %v3519_v63  ;;  %v4312_v27 = vld [vmem:[#allocation3 + $0x2c] sm:$0xf]  ;;  %v3039_v63 = vld [vmem:[#allocation3 + $0x38] sm:$0xf0]  ;;  %v4497_v53 = vld [vmem:[#allocation5 + $0xec] sm:$0xf0] }
  0xb0   :  { %v4340_v15 = vld [vmem:[#allocation3 + $0x10c] sm:$0xf] }
  0xb1   :  { %1220 = vmatpush.bf16.msra.mxu2 %v3342_v6  ;;  %1233 = vmatpush.bf16.msra.mxu3 %v3470_v8  ;;  %v3406_v6 = vor.u32 %v4406_v58, %v3405_v57  ;;  %v3394_v8 = vor.u32 %v4400_v59, %v3391_v60  ;;  %v3327_v57 = vld [vmem:[#allocation3 + $0x278] sm:$0xf0]  ;;  %v4404_v37 = vld [vmem:[#allocation3 + $0x30c] sm:$0xf] }
  0xb2   :  { %1196 = vmatpush.bf16.msra.mxu0 %v3054_v11  ;;  %1209 = vmatpush.bf16.msra.mxu1 %v3182_v12  ;;  %v3375_v11 = vld [vmem:[#allocation3 + $0x2d8] sm:$0xf0]  ;;  %v3106_v12 = vor.u32 %v4328_v0, %v3103_v3  ;;  %v4344_v0 = vld [vmem:[#allocation3 + $0x12c] sm:$0xf]  ;;  %v3330_v4 = vor.u32 %v4384_v56, %v3327_v57  ;;  %v3749_v56 = vld [vmem:[#allocation5 + $0xc0] sm:$0xf] }
  0xb3   :  { %v4493_v57 = vld [vmem:[#allocation5 + $0xcc] sm:$0xf0] }
  0xb4   :  { %1173 = vmatmul.bf16.vlgmr.msrb.gmra.mxu2 %v4894_v30  ;;  %1186 = vmatmul.bf16.vlgmr.msrb.gmra.mxu3 %v4896_v36 }
  0xb5   :  { %1221 = vmatpush.bf16.msra.mxu2 %v3326_v19  ;;  %1234 = vmatpush.bf16.msra.mxu3 %v3454_v20  ;;  %v3215_v19 = vld [vmem:[#allocation3 + $0x198] sm:$0xf0]  ;;  %v3378_v20 = vor.u32 %v4396_v10, %v3375_v11  ;;  %v282_v58 = vpop.f32.mrf.mxu2  ;;  %v295_v3 = vpop.f32.mrf.mxu3  ;;  %v4412_v11 = vld [vmem:[#allocation3 + $0x34c] sm:$0xf] }
  0xb6   :  { %1197 = vmatpush.bf16.msra.mxu0 %v3038_v24  ;;  %1210 = vmatpush.bf16.msra.mxu1 %v3166_v25  ;;  %v4392_v24 = vld [vmem:[#allocation3 + $0x2ac] sm:$0xf]  ;;  %v3359_v25 = vld [vmem:[#allocation3 + $0x2b8] sm:$0xf0]  ;;  %v3218_v29 = vor.u32 %v4356_v18, %v3215_v19  ;;  %v3750_v58 = vor.u32 %v4493_v57, %v3749_v56  ;;  %v4505_v56 = vld [vmem:[#allocation5 + $0x12c] sm:$0xf0] }
  0xb7   :  { %v4376_v19 = vld [vmem:[#allocation3 + $0x22c] sm:$0xf]  ;;  %v4443_v3 = vld [vmem:[%s5193_s5 + $0x40] sm:$0xff] }
  0xb9   :  { %1222 = vmatpush.bf16.msra.mxu2 %v3310_v34  ;;  %1235 = vmatpush.bf16.msra.mxu3 %v3438_v39  ;;  %v3071_v34 = vld [vmem:[#allocation3 + $0x78] sm:$0xf0]  ;;  %v3362_v39 = vor.u32 %v4392_v24, %v3359_v25  ;;  %v3154_v24 = vor.u32 %v4340_v15, %v3151_v16  ;;  %v4408_v25 = vld [vmem:[#allocation3 + $0x32c] sm:$0xf]  ;;  %v3877_v15 = vld [vmem:[#allocation5 + $0x1c0] sm:$0xf] }
  0xba   :  { %1198 = vmatpush.bf16.msra.mxu0 %v3022_v42  ;;  %1211 = vmatpush.bf16.msra.mxu1 %v3150_v43  ;;  %v3343_v42 = vld [vmem:[#allocation3 + $0x298] sm:$0xf0]  ;;  %v3074_v43 = vor.u32 %v4320_v33, %v3071_v34  ;;  %v4372_v34 = vld [vmem:[#allocation3 + $0x20c] sm:$0xf] }
  0xbb   :  { %v3346_v51 = vor.u32 %v4388_v41, %v3343_v42  ;;  %v4449_v41 = vld [vmem:[%s5193_s5 + $0x70] sm:$0xff]  ;;  %v3282_v42 = vor.u32 %v4372_v34, %v3279_v35  ;;  %v3845_v35 = vld [vmem:[#allocation5 + $0x180] sm:$0xf] }
  0xbd   :  { %1223 = vmatpush.bf16.msra.mxu2 %v3294_v49  ;;  %1236 = vmatpush.bf16.msra.mxu3 %v3422_v54  ;;  %v4348_v49 = vld [vmem:[#allocation3 + $0x14c] sm:$0xf]  ;;  %v269_v54 = vpop.f32.mrf.mxu1 }
  0xbe   :  { %1243 = vmatpush.bf16.msrb.mxu0 %v3138_v46  ;;  %1256 = vmatpush.bf16.msrb.mxu1 %v3266_v47  ;;  %v3471_v46 = vld [vmem:[#allocation3 + $0x398] sm:$0xf0]  ;;  %v4316_v47 = vld [vmem:[#allocation3 + $0x4c] sm:$0xf]  ;;  %v3186_v60 = vor.u32 %v4348_v49, %v3183_v50 }
  0xbf   :  { %1199 = vmatmul.bf16.vlgmr.msra.gmra.mxu0 %v4887_v2  ;;  %1212 = vmatmul.bf16.vlgmr.msra.gmra.mxu1 %v4890_v7  ;;  %v3474_v55 = vor.u32 %v4420_v45, %v3471_v46  ;;  %v3058_v59 = vor.u32 %v4316_v47, %v3055_v48  ;;  %v4440_v45 = vld [vmem:[%s5193_s5 + $0x28] sm:$0xff]  ;;  %v4447_v47 = vld [vmem:[%s5193_s5 + $0x60] sm:$0xff]  ;;  %v4438_v48 = vld [vmem:[%s5193_s5 + $0x18] sm:$0xff] }
  0xc0   :  { %v4448_v46 = vld [vmem:[%s5193_s5 + $0x68] sm:$0xff]  ;;  %v4445_v49 = vld [vmem:[%s5193_s5 + $0x50] sm:$0xff]  ;;  %v4435_v54 = vld [vmem:[%s5193_s5] sm:$0xff] }
  0xc1   :  { %1224 = vmatpush.bf16.msra.mxu2 %v3278_v1  ;;  %1237 = vmatpush.bf16.msra.mxu3 %v3406_v6  ;;  %v3167_v1 = vld [vmem:[#allocation3 + $0x138] sm:$0xf0]  ;;  %v4380_v6 = vld [vmem:[#allocation3 + $0x24c] sm:$0xf] }
  0xc2   :  { %1244 = vmatpush.bf16.msrb.mxu0 %v3122_v61  ;;  %1257 = vmatpush.bf16.msrb.mxu1 %v3250_v62  ;;  %v4416_v61 = vld [vmem:[#allocation3 + $0x36c] sm:$0xf]  ;;  %v3455_v62 = vld [vmem:[#allocation3 + $0x378] sm:$0xf0]  ;;  %v3170_v10 = vor.u32 %v4344_v0, %v3167_v1  ;;  %v4485_v0 = vld [vmem:[#allocation5 + $0x8c] sm:$0xf0] }
  0xc3   :  { %v3458_v5 = vor.u32 %v4416_v61, %v3455_v62  ;;  %v4436_v50 = vld [vmem:[%s5193_s5 + $0x8] sm:$0xff] }
  0xc4   :  { %1225 = vmatmul.bf16.vlgmr.msra.gmra.mxu2 %v4894_v30  ;;  %1238 = vmatmul.bf16.vlgmr.msra.gmra.mxu3 %v4896_v36  ;;  %v4444_v62 = vld [vmem:[%s5193_s5 + $0x48] sm:$0xff] }
  0xc5   :  { %1269 = vmatpush.bf16.msrb.mxu2 %v3394_v8  ;;  %1282 = vmatpush.bf16.msrb.mxu3 %v3522_v9  ;;  %v3311_v8 = vld [vmem:[#allocation3 + $0x258] sm:$0xf0]  ;;  %v3042_v9 = vor.u32 %v4312_v27, %v3039_v63  ;;  %v4456_v27 = vld [vmem:[%s5193_s5 + $0xa8] sm:$0xff]  ;;  %v3717_v63 = vld [vmem:[#allocation5 + $0x80] sm:$0xf] }
  0xc6   :  { %1245 = vmatpush.bf16.msrb.mxu0 %v3106_v12  ;;  %1258 = vmatpush.bf16.msrb.mxu1 %v3234_v13  ;;  %v3439_v12 = vld [vmem:[#allocation3 + $0x358] sm:$0xf0]  ;;  %v4308_v13 = vld [vmem:[#allocation3 + $0xc] sm:$0xf]  ;;  %v3314_v17 = vor.u32 %v4380_v6, %v3311_v8  ;;  %v3718_v1 = vor.u32 %v4485_v0, %v3717_v63  ;;  %v4481_v6 = vld [vmem:[#allocation5 + $0x6c] sm:$0xf0] }
  0xc7   :  { %v3442_v18 = vor.u32 %v4412_v11, %v3439_v12  ;;  %v3893_v8 = vld [vmem:[#allocation5 + $0x1e0] sm:$0xf]  ;;  %v4454_v11 = vld [vmem:[%s5193_s5 + $0x98] sm:$0xff]  ;;  %v4501_v0 = vld [vmem:[#allocation5 + $0x10c] sm:$0xf0] }
  0xc8   :  { %v3781_v63 = vld [vmem:[#allocation5 + $0x100] sm:$0xf] }
  0xc9   :  { %1270 = vmatpush.bf16.msrb.mxu2 %v3378_v20  ;;  %1283 = vmatpush.bf16.msrb.mxu3 %v3506_v23  ;;  %v3295_v20 = vld [vmem:[#allocation3 + $0x238] sm:$0xf0]  ;;  %v3026_v23 = vor.u32 %v4308_v13, %v3023_v14  ;;  %v3685_v13 = vld [vmem:[#allocation5 + $0x40] sm:$0xf]  ;;  %v4477_v14 = vld [vmem:[#allocation5 + $0x4c] sm:$0xf0] }
  0xca   :  { %1246 = vmatpush.bf16.msrb.mxu0 %v3090_v28  ;;  %1259 = vmatpush.bf16.msrb.mxu1 %v3218_v29  ;;  %v3423_v28 = vld [vmem:[#allocation3 + $0x338] sm:$0xf0]  ;;  %v3298_v32 = vor.u32 %v4376_v19, %v3295_v20  ;;  %v3686_v16 = vor.u32 %v4477_v14, %v3685_v13  ;;  %v4453_v19 = vld [vmem:[%s5193_s5 + $0x90] sm:$0xff]  ;;  %v3669_v20 = vld [vmem:[#allocation5 + $0x20] sm:$0xf] }
  0xcb   :  { %v4442_v29 = vld [vmem:[%s5193_s5 + $0x38] sm:$0xff]  ;;  %v3426_v33 = vor.u32 %v4408_v25, %v3423_v28  ;;  %v3861_v25 = vld [vmem:[#allocation5 + $0x1a0] sm:$0xf]  ;;  %v4521_v28 = vld [vmem:[#allocation5 + $0x1ac] sm:$0xf0] }
  0xcd   :  { %1271 = vmatpush.bf16.msrb.mxu2 %v3362_v39  ;;  %1284 = vmatpush.bf16.msrb.mxu3 %v3490_v40  ;;  %v3407_v39 = vld [vmem:[#allocation3 + $0x318] sm:$0xf0]  ;;  %v4441_v40 = vld [vmem:[%s5193_s5 + $0x30] sm:$0xff] }
  0xce   :  { %1247 = vmatpush.bf16.msrb.mxu0 %v3074_v43  ;;  %1260 = vmatpush.bf16.msrb.mxu1 %v3202_v44  ;;  %v3410_v43 = vor.u32 %v4404_v37, %v3407_v39  ;;  %v4458_v44 = vld [vmem:[%s5193_s5 + $0xb8] sm:$0xff]  ;;  %v4517_v37 = vld [vmem:[#allocation5 + $0x18c] sm:$0xf0] }
  0xcf   :  { %v3846_v39 = vor.u32 %v4517_v37, %v3845_v35 }
  0xd1   :  { %1272 = vmatpush.bf16.msrb.mxu2 %v3346_v51  ;;  %1285 = vmatpush.bf16.msrb.mxu3 %v3474_v55  ;;  %v3765_v51 = vld [vmem:[#allocation5 + $0xe0] sm:$0xf] }
  0xd2   :  { %1248 = vmatpush.bf16.msrb.mxu0 %v3058_v59  ;;  %1261 = vmatpush.bf16.msrb.mxu1 %v3186_v60  ;;  %v3766_v55 = vor.u32 %v4497_v53, %v3765_v51  ;;  %v3733_v59 = vld [vmem:[#allocation5 + $0xa0] sm:$0xf]  ;;  %v4489_v60 = vld [vmem:[#allocation5 + $0xac] sm:$0xf0] }
  0xd3   :  { %v3734_v61 = vor.u32 %v4489_v60, %v3733_v59  ;;  %v5001_v51 = vld [vmem:[%s5192_s4] sm:$0xf]  ;;  %v4553_v60 = vld [vmem:[#allocation5 + $0x2ac] sm:$0xf0] }
  0xd4   :  { %v3989_v59 = vld [vmem:[#allocation5 + $0x2a0] sm:$0xf] }
  0xd5   :  { %1273 = vmatpush.bf16.msrb.mxu2 %v3330_v4  ;;  %1286 = vmatpush.bf16.msrb.mxu3 %v3458_v5  ;;  %v4455_v4 = vld [vmem:[%s5193_s5 + $0xa0] sm:$0xff] }
  0xd6   :  { %1249 = vmatpush.bf16.msrb.mxu0 %v3042_v9  ;;  %1262 = vmatpush.bf16.msrb.mxu1 %v3170_v10  ;;  %v3701_v5 = vld [vmem:[#allocation5 + $0x60] sm:$0xf]  ;;  %v4529_v10 = vld [vmem:[#allocation5 + $0x1ec] sm:$0xf0] }
  0xd7   :  { %v3702_v9 = vor.u32 %v4481_v6, %v3701_v5  ;;  %v3894_v12 = vor.u32 %v4529_v10, %v3893_v8  ;;  %v4462_v8 = vld [vmem:[%s5193_s5 + $0xd8] sm:$0xff]  ;;  %v3957_v10 = vld [vmem:[#allocation5 + $0x260] sm:$0xf] }
  0xd9   :  { %1274 = vmatpush.bf16.msrb.mxu2 %v3314_v17  ;;  %1287 = vmatpush.bf16.msrb.mxu3 %v3442_v18  ;;  %v4525_v17 = vld [vmem:[#allocation5 + $0x1cc] sm:$0xf0] }
  0xda   :  { %1250 = vmatpush.bf16.msrb.mxu0 %v3026_v23  ;;  %1263 = vmatpush.bf16.msrb.mxu1 %v3154_v24  ;;  %v3878_v18 = vor.u32 %v4525_v17, %v3877_v15  ;;  %v4473_v23 = vld [vmem:[#allocation5 + $0x2c] sm:$0xf0] }
  0xdb   :  { %v3670_v24 = vor.u32 %v4473_v23, %v3669_v20  ;;  %v4461_v15 = vld [vmem:[%s5193_s5 + $0xd0] sm:$0xff] }
  0xdc   :  { %v4541_v17 = vld [vmem:[#allocation5 + $0x24c] sm:$0xf0] }
  0xdd   :  { %1275 = vmatpush.bf16.msrb.mxu2 %v3298_v32  ;;  %1288 = vmatpush.bf16.msrb.mxu3 %v3426_v33  ;;  %v3653_v32 = vld [vmem:[#allocation5] sm:$0xf]  ;;  %v4469_v33 = vld [vmem:[#allocation5 + $0xc] sm:$0xf0] }
  0xde   :  { %1563 = vmatpush.bf16.msra.mxu0 %v4442_v29  ;;  %1576 = vmatpush.bf16.msra.mxu1 %v4450_v31  ;;  %v3862_v29 = vor.u32 %v4521_v28, %v3861_v25  ;;  %v4452_v31 = vld [vmem:[%s5193_s5 + $0x88] sm:$0xff]  ;;  %v3654_v34 = vor.u32 %v4469_v33, %v3653_v32  ;;  %v3767_v25 = vld [vmem:[#allocation5 + $0xf0] sm:$0xf0]  ;;  %v3925_v32 = vld [vmem:[#allocation5 + $0x220] sm:$0xf] }
  0xdf   :  { %1251 = vmatmul.bf16.vlgmr.msrb.gmra.mxu0 %v4887_v2  ;;  %1264 = vmatmul.bf16.vlgmr.msrb.gmra.mxu1 %v4890_v7  ;;  %v4457_v2 = vld [vmem:[%s5193_s5 + $0xb0] sm:$0xff]  ;;  %v4439_v7 = vld [vmem:[%s5193_s5 + $0x20] sm:$0xff] }
  0xe0   :  { %v4537_v33 = vld [vmem:[#allocation5 + $0x22c] sm:$0xf0] }
  0xe1   :  { %1276 = vmatpush.bf16.msrb.mxu2 %v3282_v42  ;;  %1289 = vmatpush.bf16.msrb.mxu3 %v3410_v43  ;;  %v3829_v42 = vld [vmem:[#allocation5 + $0x160] sm:$0xf]  ;;  %v4513_v43 = vld [vmem:[#allocation5 + $0x16c] sm:$0xf0]  ;;  %v3926_v35 = vor.u32 %v4537_v33, %v3925_v32  ;;  %v3879_v32 = vld [vmem:[#allocation5 + $0x1d0] sm:$0xf0] }
  0xe2   :  { %1564 = vmatpush.bf16.msra.mxu0 %v4441_v40  ;;  %1577 = vmatpush.bf16.msra.mxu1 %v4449_v41  ;;  %v4451_v40 = vld [vmem:[%s5193_s5 + $0x80] sm:$0xff]  ;;  %v4466_v41 = vld [vmem:[%s5193_s5 + $0xf8] sm:$0xff] }
  0xe3   :  { %v4085_v33 = vld [vmem:[#allocation5 + $0x360] sm:$0xf] }
  0xe4   :  { %1277 = vmatmul.bf16.vlgmr.msrb.gmra.mxu2 %v4894_v30  ;;  %1290 = vmatmul.bf16.vlgmr.msrb.gmra.mxu3 %v4896_v36  ;;  %v4446_v30 = vld [vmem:[%s5193_s5 + $0x58] sm:$0xff]  ;;  %v4437_v36 = vld [vmem:[%s5193_s5 + $0x10] sm:$0xff] }
  0xe5   :  { %1589 = vmatpush.bf16.msra.mxu2 %v4458_v44  ;;  %v4021_v44 = vld [vmem:[#allocation5 + $0x2e0] sm:$0xf]  ;;  %1602 = vmatpush.bf16.msra.mxu3 %v4466_v41  ;;  %v3751_v41 = vld [vmem:[#allocation5 + $0xd0] sm:$0xf0] }
  0xe6   :  { %1565 = vmatpush.bf16.msra.mxu0 %v4440_v45  ;;  %1578 = vmatpush.bf16.msra.mxu1 %v4448_v46  ;;  %v3830_v45 = vor.u32 %v4513_v43, %v3829_v42  ;;  %v4561_v46 = vld [vmem:[#allocation5 + $0x2ec] sm:$0xf0]  ;;  %v440_v43 = vperm.slane %v5001_v51, 1 }
  0xe9   :  { %1590 = vmatpush.bf16.msra.mxu2 %v4457_v2  ;;  %v4022_v2 = vor.u32 %v4561_v46, %v4021_v44  ;;  %v4459_v44 = vld [vmem:[%s5193_s5 + $0xc0] sm:$0xff]  ;;  %v4533_v46 = vld [vmem:[#allocation5 + $0x20c] sm:$0xf0] }
  0xea   :  { %1566 = vmatpush.bf16.msra.mxu0 %v4439_v7  ;;  %1579 = vmatpush.bf16.msra.mxu1 %v4447_v47  ;;  %v4465_v7 = vld [vmem:[%s5193_s5 + $0xf0] sm:$0xff]  ;;  %v3813_v47 = vld [vmem:[#allocation5 + $0x140] sm:$0xf] }
  0xeb   :  { %1603 = vmatpush.bf16.msra.mxu3 %v4465_v7 }
  0xed   :  { %1591 = vmatpush.bf16.msra.mxu2 %v4456_v27  ;;  %v4463_v27 = vld [vmem:[%s5193_s5 + $0xe0] sm:$0xff] }
  0xee   :  { %1567 = vmatpush.bf16.msra.mxu0 %v4438_v48  ;;  %1580 = vmatpush.bf16.msra.mxu1 %v4446_v30  ;;  %v4509_v48 = vld [vmem:[#allocation5 + $0x14c] sm:$0xf0]  ;;  %v4005_v30 = vld [vmem:[#allocation5 + $0x2c0] sm:$0xf] }
  0xf1   :  { %1592 = vmatpush.bf16.msra.mxu2 %v4455_v4  ;;  %v4549_v4 = vld [vmem:[#allocation5 + $0x28c] sm:$0xf0] }
  0xf2   :  { %1568 = vmatpush.bf16.msra.mxu0 %v4437_v36  ;;  %1581 = vmatpush.bf16.msra.mxu1 %v4445_v49  ;;  %v3814_v36 = vor.u32 %v4509_v48, %v3813_v47  ;;  %v4557_v49 = vld [vmem:[#allocation5 + $0x2cc] sm:$0xf0]  ;;  %v4149_v47 = vld [vmem:[#allocation5 + $0x3e0] sm:$0xf] }
  0xf3   :  { %v4593_v48 = vld [vmem:[#allocation5 + $0x3ec] sm:$0xf0] }
  0xf5   :  { %1593 = vmatpush.bf16.msra.mxu2 %v4454_v11  ;;  %v4545_v11 = vld [vmem:[#allocation5 + $0x26c] sm:$0xf0] }
  0xf6   :  { %1569 = vmatpush.bf16.msra.mxu0 %v4436_v50  ;;  %1582 = vmatpush.bf16.msra.mxu1 %v4444_v62  ;;  %v4006_v50 = vor.u32 %v4557_v49, %v4005_v30  ;;  %v3990_v62 = vor.u32 %v4553_v60, %v3989_v59  ;;  %v3958_v13 = vor.u32 %v4545_v11, %v3957_v10  ;;  %v97_v30 = vperm.slane %v4882_v52, 4  ;;  %v4479_v10 = vld [vmem:[#allocation5 + $0x64] sm:$0xf]  ;;  %v3703_v11 = vld [vmem:[#allocation5 + $0x70] sm:$0xf0] }
  0xf7   :  { %v4150_v49 = vor.u32 %v4593_v48, %v4149_v47  ;;  %v4069_v47 = vld [vmem:[#allocation5 + $0x340] sm:$0xf]  ;;  %v4573_v48 = vld [vmem:[#allocation5 + $0x34c] sm:$0xf0] }
  0xf9   :  { %1594 = vmatpush.bf16.msra.mxu2 %v4453_v19 }
  0xfa   :  { %1570 = vmatpush.bf16.msra.mxu0 %v4435_v54  ;;  %1583 = vmatpush.bf16.msra.mxu1 %v4443_v3  ;;  %v4464_v54 = vld [vmem:[%s5193_s5 + $0xe8] sm:$0xff]  ;;  %v3973_v3 = vld [vmem:[#allocation5 + $0x280] sm:$0xf] }
  0xfb   :  { %1604 = vmatpush.bf16.msra.mxu3 %v4464_v54  ;;  %v3974_v6 = vor.u32 %v4549_v4, %v3973_v3 }
  0xfd   :  { %1595 = vmatpush.bf16.msra.mxu2 %v4452_v31  ;;  %v4460_v31 = vld [vmem:[%s5193_s5 + $0xc8] sm:$0xff] }
  0xfe   :  { %2397 = vmatpush.bf16.msrb.mxu0 %v3766_v55  ;;  %2410 = vmatpush.bf16.msrb.mxu1 %v3894_v12  ;;  %v3797_v55 = vld [vmem:[#allocation5 + $0x120] sm:$0xf] }
  0xff   :  { %1605 = vmatpush.bf16.msra.mxu3 %v4463_v27 }
 0x101   :  { %1596 = vmatpush.bf16.msra.mxu2 %v4451_v40  ;;  %v4491_v40 = vld [vmem:[#allocation5 + $0xc4] sm:$0xf] }
 0x102   :  { %2398 = vmatpush.bf16.msrb.mxu0 %v3750_v58  ;;  %2411 = vmatpush.bf16.msrb.mxu1 %v3878_v18  ;;  %v3798_v58 = vor.u32 %v4505_v56, %v3797_v55  ;;  %v3735_v56 = vld [vmem:[#allocation5 + $0xb0] sm:$0xf0] }
 0x103   :  { %1606 = vmatpush.bf16.msra.mxu3 %v4462_v8 }
 0x105   :  { %2423 = vmatpush.bf16.msrb.mxu2 %v4022_v2 }
 0x106   :  { %2399 = vmatpush.bf16.msrb.mxu0 %v3734_v61  ;;  %2412 = vmatpush.bf16.msrb.mxu1 %v3862_v29  ;;  %v439_v61 = vperm.slane %v5001_v51, 0 }
 0x107   :  { %1607 = vmatpush.bf16.msra.mxu3 %v4461_v15  ;;  %v4581_v15 = vld [vmem:[#allocation5 + $0x38c] sm:$0xf0] }
 0x109   :  { %2424 = vmatpush.bf16.msrb.mxu2 %v4006_v50  ;;  %v3754_v50 = vor.u32 %v4491_v40, %v3751_v41  ;;  %v5031_v40 = vld [vmem:[%s5190_s2] sm:$0xff] }
 0x10a   :  { %2400 = vmatpush.bf16.msrb.mxu0 %v3718_v1  ;;  %2413 = vmatpush.bf16.msrb.mxu1 %v3846_v39  ;;  %v3782_v1 = vor.u32 %v4501_v0, %v3781_v63  ;;  %v3719_v63 = vld [vmem:[#allocation5 + $0x90] sm:$0xf0]  ;;  %v4117_v0 = vld [vmem:[#allocation5 + $0x3a0] sm:$0xf]  ;;  %v98_v41 = vperm.slane %v5031_v40, 5 }
 0x10b   :  { %1608 = vmatpush.bf16.msra.mxu3 %v4460_v31 }
 0x10d   :  { %2425 = vmatpush.bf16.msrb.mxu2 %v3990_v62  ;;  %v4483_v62 = vld [vmem:[#allocation5 + $0x84] sm:$0xf] }
 0x10e   :  { %2401 = vmatpush.bf16.msrb.mxu0 %v3702_v9  ;;  %2414 = vmatpush.bf16.msrb.mxu1 %v3830_v45  ;;  %v3909_v45 = vld [vmem:[#allocation5 + $0x200] sm:$0xf] }
 0x10f   :  { %v3910_v7 = vor.u32 %v4533_v46, %v3909_v45  ;;  %1609 = vmatpush.bf16.msra.mxu3 %v4459_v44  ;;  %v4471_v45 = vld [vmem:[#allocation5 + $0x24] sm:$0xf]  ;;  %v3671_v46 = vld [vmem:[#allocation5 + $0x30] sm:$0xf0] }
 0x111   :  { %2426 = vmatpush.bf16.msrb.mxu2 %v3974_v6 }
 0x112   :  { %2402 = vmatpush.bf16.msrb.mxu0 %v3686_v16  ;;  %2415 = vmatpush.bf16.msrb.mxu1 %v3814_v36  ;;  %v3941_v16 = vld [vmem:[#allocation5 + $0x240] sm:$0xf] }
 0x113   :  { %v3942_v19 = vor.u32 %v4541_v17, %v3941_v16  ;;  %2436 = vmatpush.bf16.msrb.mxu3 %v4150_v49  ;;  %v4070_v49 = vor.u32 %v4573_v48, %v4069_v47  ;;  %v4486_v47 = vld [vmem:[#allocation5 + $0x94] sm:$0xf0] }
 0x115   :  { %2427 = vmatpush.bf16.msrb.mxu2 %v3958_v13 }
 0x116   :  { %2403 = vmatpush.bf16.msrb.mxu0 %v3670_v24  ;;  %2416 = vmatpush.bf16.msrb.mxu1 %v3798_v58  ;;  %v4495_v24 = vld [vmem:[#allocation5 + $0xe4] sm:$0xf]  ;;  %v4589_v58 = vld [vmem:[#allocation5 + $0x3cc] sm:$0xf0] }
 0x117   :  { %v3770_v39 = vor.u32 %v4495_v24, %v3767_v25  ;;  %v4475_v24 = vld [vmem:[#allocation5 + $0x44] sm:$0xf]  ;;  %v3687_v25 = vld [vmem:[#allocation5 + $0x50] sm:$0xf0] }
 0x119   :  { %v1096_v53 = vpop.f32.mrf.mxu0  ;;  %v1109_v57 = vpop.f32.mrf.mxu1  ;;  %2428 = vmatpush.bf16.msrb.mxu2 %v3942_v19 }
 0x11a   :  { %2404 = vmatpush.bf16.msrb.mxu0 %v3654_v34  ;;  %v1097_v5 = vadd.f32 %v1096_v53, %v439_v61  ;;  %2417 = vmatpush.bf16.msrb.mxu1 %v3782_v1  ;;  %v4487_v53 = vld [vmem:[#allocation5 + $0xa4] sm:$0xf]  ;;  %v255_v61 = vadd.f32 %v4906_v21, %v97_v30  ;;  %v4585_v1 = vld [vmem:[#allocation5 + $0x3ac] sm:$0xf0]  ;;  %v3895_v21 = vld [vmem:[#allocation5 + $0x1f0] sm:$0xf0] }
 0x11b   :  { %v3738_v52 = vor.u32 %v4487_v53, %v3735_v56  ;;  %v4118_v4 = vor.u32 %v4585_v1, %v4117_v0  ;;  %v268_v53 = vadd.f32 %v4908_v22, %v98_v41  ;;  %v4467_v56 = vld [vmem:[#allocation5 + $0x4] sm:$0xf] }
 0x11c   :  { %v1110_v14 = vadd.f32 %v1109_v57, %v1097_v5  ;;  %v4133_v57 = vld [vmem:[#allocation5 + $0x3c0] sm:$0xf]  ;;  %v301_v5 = vmax.f32 %v255_v61, 0.0  ;;  %v4569_v61 = vld [vmem:[#allocation5 + $0x32c] sm:$0xf0] }
 0x11d   :  { %2429 = vmatpush.bf16.msrb.mxu2 %v3926_v35  ;;  %v4134_v60 = vor.u32 %v4589_v58, %v4133_v57  ;;  %v441_v35 = vperm.slane %v5001_v51, 2  ;;  %v3655_v57 = vld [vmem:[#allocation5 + $0x10] sm:$0xf0]  ;;  %v4515_v58 = vld [vmem:[#allocation5 + $0x184] sm:$0xf] }
 0x11e   :  { %v3658_v22 = vor.u32 %v4467_v56, %v3655_v57  ;;  %v3709_v56 = vld [vmem:[#allocation5 + $0x68] sm:$0xf]  ;;  %v4482_v57 = vld [vmem:[#allocation5 + $0x74] sm:$0xf0] }
 0x11f   :  { %2437 = vmatpush.bf16.msrb.mxu3 %v4134_v60  ;;  %v4053_v60 = vld [vmem:[#allocation5 + $0x320] sm:$0xf] }
 0x121   :  { %v1098_v9 = vpop.f32.mrf.mxu0  ;;  %v1111_v12 = vpop.f32.mrf.mxu1  ;;  %2430 = vmatpush.bf16.msrb.mxu2 %v3910_v7  ;;  %v3863_v7 = vld [vmem:[#allocation5 + $0x1b0] sm:$0xf0] }
 0x122   :  { %v3722_v9 = vor.u32 %v4483_v62, %v3719_v63  ;;  %v4527_v12 = vld [vmem:[#allocation5 + $0x1e4] sm:$0xf]  ;;  %v3773_v62 = vld [vmem:[#allocation5 + $0xe8] sm:$0xf]  ;;  %v4054_v63 = vor.u32 %v4569_v61, %v4053_v60  ;;  %v4530_v60 = vld [vmem:[#allocation5 + $0x1f4] sm:$0xf0] }
 0x123   :  { %2438 = vmatpush.bf16.msrb.mxu3 %v4118_v4 }
 0x127   :  { %v1122_v18 = vpop.f32.mrf.mxu2  ;;  %v1135_v23 = vpop.f32.mrf.mxu3 }
 0x128   :  { %v1123_v20 = vadd.f32 %v1122_v18, %v1110_v14  ;;  %v4101_v14 = vld [vmem:[#allocation5 + $0x380] sm:$0xf] }
 0x129   :  { %v1148_v29 = vpop.f32.mrf.mxu0  ;;  %v1161_v34 = vpop.f32.mrf.mxu1  ;;  %v4102_v17 = vor.u32 %v4581_v15, %v4101_v14  ;;  %v3757_v14 = vld [vmem:[#allocation5 + $0xc8] sm:$0xf]  ;;  %v4494_v15 = vld [vmem:[#allocation5 + $0xd4] sm:$0xf0] }
 0x12a   :  { %v1136_v28 = vadd.f32 %v1135_v23, %v1123_v20  ;;  %v1149_v54 = vadd.f32 %v1148_v29, %v440_v43  ;;  %v3706_v20 = vor.u32 %v4479_v10, %v3703_v11  ;;  %v3898_v23 = vor.u32 %v4527_v12, %v3895_v21  ;;  %v4559_v10 = vld [vmem:[#allocation5 + $0x2e4] sm:$0xf]  ;;  %v4037_v11 = vld [vmem:[#allocation5 + $0x300] sm:$0xf]  ;;  %v4565_v12 = vld [vmem:[#allocation5 + $0x30c] sm:$0xf0] }
 0x12b   :  { %v5025_v29 = vpack.c.bf16 %v301_v5, %v301_v5  ;;  %2439 = vmatpush.bf16.msrb.mxu3 %v4102_v17  ;;  %v3690_v43 = vor.u32 %v4475_v24, %v3687_v25  ;;  %v4023_v21 = vld [vmem:[#allocation5 + $0x2f0] sm:$0xf0]  ;;  %v4507_v24 = vld [vmem:[#allocation5 + $0x144] sm:$0xf] }
 0x12c   :  { %v1295_v37 = vmax.f32 %v1136_v28, 0.0  ;;  %v1162_v27 = vadd.f32 %v1161_v34, %v1149_v54  ;;  %v4523_v28 = vld [vmem:[#allocation5 + $0x1c4] sm:$0xf]  ;;  %v4577_v34 = vld [vmem:[#allocation5 + $0x36c] sm:$0xf0]  ;;  %v3674_v54 = vor.u32 %v4471_v45, %v3671_v46 }
 0x12d   :  { %v3882_v44 = vor.u32 %v4523_v28, %v3879_v32  ;;  %v3815_v25 = vld [vmem:[#allocation5 + $0x150] sm:$0xf0]  ;;  %v4555_v28 = vld [vmem:[#allocation5 + $0x2c4] sm:$0xf] }
 0x12e   :  { %v1299_v42 = vpack.c.bf16 %v1295_v37, %v1295_v37  ;;  %v4007_v32 = vld [vmem:[#allocation5 + $0x2d0] sm:$0xf0]  ;;  %v3818_v41 = vor.u32 %v4507_v24, %v3815_v25  ;;  %v4551_v46 = vld [vmem:[#allocation5 + $0x2a4] sm:$0xf] }
 0x12f   :  { %v1124_v2 = vpop.f32.mrf.mxu2  ;;  %v1137_v36 = vpop.f32.mrf.mxu3  ;;  %v3799_v45 = vld [vmem:[#allocation5 + $0x130] sm:$0xf0]  ;;  %v4535_v24 = vld [vmem:[#allocation5 + $0x224] sm:$0xf] }
 0x130   :  { %1571 = vmatmul.bf16.vlgmr.msra.gmra.mxu0 %v1299_v42  ;;  %v4519_v2 = vld [vmem:[#allocation5 + $0x1a4] sm:$0xf]  ;;  %v3927_v25 = vld [vmem:[#allocation5 + $0x230] sm:$0xf0] }
 0x131   :  { %2449 = vmatpush.bf16.msra.mxu0 %v3770_v39  ;;  %v1150_v55 = vpop.f32.mrf.mxu0  ;;  %v1163_v59 = vpop.f32.mrf.mxu1  ;;  %v4086_v39 = vor.u32 %v4577_v34, %v4085_v33  ;;  %v3741_v33 = vld [vmem:[#allocation5 + $0xa8] sm:$0xf]  ;;  %v4490_v34 = vld [vmem:[#allocation5 + $0xb4] sm:$0xf0] }
 0x132   :  { %v3866_v55 = vor.u32 %v4519_v2, %v3863_v7  ;;  %v3847_v59 = vld [vmem:[#allocation5 + $0x190] sm:$0xf0]  ;;  %v3725_v7 = vld [vmem:[#allocation5 + $0x88] sm:$0xf] }
 0x133   :  { %2440 = vmatpush.bf16.msrb.mxu3 %v4086_v39  ;;  %v3850_v5 = vor.u32 %v4515_v58, %v3847_v59  ;;  %v99_v39 = vperm.slane %v5031_v40, 6  ;;  %v3991_v2 = vld [vmem:[#allocation5 + $0x2b0] sm:$0xf0]  ;;  %v3901_v59 = vld [vmem:[#allocation5 + $0x1e8] sm:$0xf] }
 0x135   :  { %2450 = vmatpush.bf16.msra.mxu0 %v3754_v50 }
 0x137   :  { %v1174_v3 = vpop.f32.mrf.mxu2  ;;  %v1187_v8 = vpop.f32.mrf.mxu3  ;;  %2441 = vmatpush.bf16.msrb.mxu3 %v4070_v49  ;;  %v3726_v49 = vor.u32 %v4486_v47, %v3725_v7 }
 0x138   :  { %v1175_v6 = vadd.f32 %v1174_v3, %v1162_v27  ;;  %v4498_v27 = vld [vmem:[#allocation5 + $0xf4] sm:$0xf0]  ;;  %v302_v3 = vmax.f32 %v268_v53, 0.0  ;;  %v3783_v53 = vld [vmem:[#allocation5 + $0x110] sm:$0xf0] }
 0x139   :  { %2451 = vmatpush.bf16.msra.mxu0 %v3738_v52 }
 0x13a   :  { %v1188_v13 = vadd.f32 %v1187_v8, %v1175_v6  ;;  %v4511_v6 = vld [vmem:[#allocation5 + $0x164] sm:$0xf]  ;;  %v3831_v8 = vld [vmem:[#allocation5 + $0x170] sm:$0xf0] }
 0x13b   :  { %2442 = vmatpush.bf16.msrb.mxu3 %v4054_v63  ;;  %v3710_v63 = vor.u32 %v4482_v57, %v3709_v56  ;;  %v4492_v56 = vld [vmem:[#allocation5 + $0xcc] sm:$0xf]  ;;  %v3759_v57 = vld [vmem:[#allocation5 + $0xd8] sm:$0xf0] }
 0x13c   :  { %v1200_v16 = vpop.f32.mrf.mxu0  ;;  %v1296_v18 = vmax.f32 %v1188_v13, 0.0  ;;  %v1213_v19 = vpop.f32.mrf.mxu1 }
 0x13d   :  { %2452 = vmatpush.bf16.msra.mxu0 %v3722_v9  ;;  %v1201_v30 = vadd.f32 %v1200_v16, %v441_v35  ;;  %v3774_v9 = vor.u32 %v4498_v27, %v3773_v62  ;;  %v4038_v16 = vor.u32 %v4565_v12, %v4037_v11  ;;  %v442_v27 = vperm.slane %v5001_v51, 3 }
 0x13e   :  { %v1300_v31 = vpack.c.bf16 %v1296_v18, %v1296_v18  ;;  %v3834_v18 = vor.u32 %v4511_v6, %v3831_v8  ;;  %v4526_v6 = vld [vmem:[#allocation5 + $0x1d4] sm:$0xf0] }
 0x13f   :  { %v1176_v37 = vpop.f32.mrf.mxu2  ;;  %v1189_v42 = vpop.f32.mrf.mxu3  ;;  %v1214_v52 = vadd.f32 %v1213_v19, %v1201_v30  ;;  %v5036_v19 = vpack.c.bf16 %v302_v3, %v302_v3  ;;  %2443 = vmatpush.bf16.msrb.mxu3 %v4038_v16  ;;  %v281_v30 = vadd.f32 %v4910_v26, %v99_v39  ;;  %v3959_v3 = vld [vmem:[#allocation5 + $0x270] sm:$0xf0]  ;;  %v3869_v16 = vld [vmem:[#allocation5 + $0x1a8] sm:$0xf]  ;;  %v4496_v39 = vld [vmem:[#allocation5 + $0xec] sm:$0xf] }
 0x140   :  { %1584 = vmatmul.bf16.vlgmr.msra.gmra.mxu1 %v1300_v31  ;;  %2405 = vmatmul.bf16.vlgmr.msrb.gmra.mxu0 %v5025_v29  ;;  %v4010_v42 = vor.u32 %v4555_v28, %v4007_v32  ;;  %v3661_v32 = vld [vmem:[#allocation5 + $0x8] sm:$0xf] }
 0x141   :  { %2453 = vmatpush.bf16.msra.mxu0 %v3706_v20  ;;  %2462 = vmatpush.bf16.msra.mxu1 %v3898_v23  ;;  %v4026_v20 = vor.u32 %v4559_v10, %v4023_v21  ;;  %v3758_v23 = vor.u32 %v4494_v15, %v3757_v14  ;;  %v303_v62 = vmax.f32 %v281_v30, 0.0  ;;  %v4539_v10 = vld [vmem:[#allocation5 + $0x244] sm:$0xf]  ;;  %v3677_v21 = vld [vmem:[#allocation5 + $0x28] sm:$0xf] }
 0x142   :  { %v4474_v14 = vld [vmem:[#allocation5 + $0x34] sm:$0xf0]  ;;  %v4591_v30 = vld [vmem:[#allocation5 + $0x3e4] sm:$0xf] }
 0x143   :  { %v5043_v11 = vpack.c.bf16 %v303_v62, %v303_v62  ;;  %v4587_v62 = vld [vmem:[#allocation5 + $0x3c4] sm:$0xf] }
 0x144   :  { %v1202_v36 = vpop.f32.mrf.mxu0  ;;  %v1215_v50 = vpop.f32.mrf.mxu1 }
 0x145   :  { %2454 = vmatpush.bf16.msra.mxu0 %v3690_v43  ;;  %2463 = vmatpush.bf16.msra.mxu1 %v3882_v44  ;;  %v3742_v43 = vor.u32 %v4490_v34, %v3741_v33  ;;  %v4503_v44 = vld [vmem:[#allocation5 + $0x124] sm:$0xf]  ;;  %v3994_v36 = vor.u32 %v4551_v46, %v3991_v2  ;;  %v4470_v33 = vld [vmem:[#allocation5 + $0x14] sm:$0xf0]  ;;  %v3853_v34 = vld [vmem:[#allocation5 + $0x188] sm:$0xf] }
 0x146   :  { %v3802_v48 = vor.u32 %v4503_v44, %v3799_v45  ;;  %v4499_v50 = vld [vmem:[#allocation5 + $0x104] sm:$0xf]  ;;  %v3930_v44 = vor.u32 %v4535_v24, %v3927_v25  ;;  %v3662_v45 = vor.u32 %v4470_v33, %v3661_v32  ;;  %v3911_v2 = vld [vmem:[#allocation5 + $0x210] sm:$0xf0]  ;;  %v3789_v32 = vld [vmem:[#allocation5 + $0x108] sm:$0xf] }
 0x147   :  { %v1226_v0 = vpop.f32.mrf.mxu2  ;;  %v1239_v1 = vpop.f32.mrf.mxu3  ;;  %v4531_v46 = vld [vmem:[#allocation5 + $0x204] sm:$0xf]  ;;  %v4502_v33 = vld [vmem:[#allocation5 + $0x114] sm:$0xf0] }
 0x148   :  { %v1227_v4 = vadd.f32 %v1226_v0, %v1214_v52  ;;  %v3786_v52 = vor.u32 %v4499_v50, %v3783_v53  ;;  %v4543_v0 = vld [vmem:[#allocation5 + $0x264] sm:$0xf]  ;;  %v4514_v50 = vld [vmem:[#allocation5 + $0x174] sm:$0xf0]  ;;  %v4029_v53 = vld [vmem:[#allocation5 + $0x2e8] sm:$0xf] }
 0x149   :  { %2455 = vmatpush.bf16.msra.mxu0 %v3674_v54  ;;  %2464 = vmatpush.bf16.msra.mxu1 %v3866_v55  ;;  %v4547_v54 = vld [vmem:[#allocation5 + $0x284] sm:$0xf]  ;;  %v3975_v55 = vld [vmem:[#allocation5 + $0x290] sm:$0xf0]  ;;  %v3962_v8 = vor.u32 %v4543_v0, %v3959_v3  ;;  %v3762_v0 = vor.u32 %v4492_v56, %v3759_v57  ;;  %v4013_v3 = vld [vmem:[#allocation5 + $0x2c8] sm:$0xf] }
 0x14a   :  { %v1240_v13 = vadd.f32 %v1239_v1, %v1227_v4  ;;  %v3978_v26 = vor.u32 %v4547_v54, %v3975_v55  ;;  %v3902_v1 = vor.u32 %v4530_v60, %v3901_v59  ;;  %v3693_v4 = vld [vmem:[#allocation5 + $0x48] sm:$0xf]  ;;  %v4562_v54 = vld [vmem:[#allocation5 + $0x2f4] sm:$0xf0] }
 0x14c   :  { %v1297_v17 = vmax.f32 %v1240_v13, 0.0  ;;  %v3943_v13 = vld [vmem:[#allocation5 + $0x250] sm:$0xf0] }
 0x14d   :  { %2456 = vmatpush.bf16.msra.mxu0 %v3658_v22  ;;  %2465 = vmatpush.bf16.msra.mxu1 %v3850_v5  ;;  %v4478_v22 = vld [vmem:[#allocation5 + $0x54] sm:$0xf0]  ;;  %v3885_v5 = vld [vmem:[#allocation5 + $0x1c8] sm:$0xf] }
 0x14e   :  { %v1301_v31 = vpack.c.bf16 %v1297_v17, %v1297_v17  ;;  %v3886_v12 = vor.u32 %v4526_v6, %v3885_v5  ;;  %v4522_v17 = vld [vmem:[#allocation5 + $0x1b4] sm:$0xf0]  ;;  %v4488_v5 = vld [vmem:[#allocation5 + $0xac] sm:$0xf]  ;;  %v3743_v6 = vld [vmem:[#allocation5 + $0xb8] sm:$0xf0] }
 0x14f   :  { %v1228_v35 = vpop.f32.mrf.mxu2  ;;  %v1241_v37 = vpop.f32.mrf.mxu3 }
 0x150   :  { %2418 = vmatmul.bf16.vlgmr.msrb.gmra.mxu1 %v5036_v19  ;;  %2457 = vmatmul.bf16.vlgmr.msra.gmra.mxu0 %v5025_v29  ;;  %v4518_v37 = vld [vmem:[#allocation5 + $0x194] sm:$0xf0] }
 0x151   :  { %2501 = vmatpush.bf16.msrb.mxu0 %v3774_v9  ;;  %1597 = vmatmul.bf16.vlgmr.msra.gmra.mxu2 %v1301_v31  ;;  %v3694_v9 = vor.u32 %v4478_v22, %v3693_v4  ;;  %v3870_v31 = vor.u32 %v4522_v17, %v3869_v16  ;;  %v3854_v47 = vor.u32 %v4518_v37, %v3853_v34  ;;  %v4558_v4 = vld [vmem:[#allocation5 + $0x2d4] sm:$0xf0]  ;;  %v3997_v16 = vld [vmem:[#allocation5 + $0x2a8] sm:$0xf] }
 0x152   :  { %2466 = vmatpush.bf16.msra.mxu1 %v3834_v18  ;;  %2475 = vmatpush.bf16.msra.mxu2 %v4026_v20  ;;  %v3946_v20 = vor.u32 %v4539_v10, %v3943_v13  ;;  %v4119_v13 = vld [vmem:[#allocation5 + $0x3b0] sm:$0xf0]  ;;  %v4554_v17 = vld [vmem:[#allocation5 + $0x2b4] sm:$0xf0] }
 0x153   :  { %v4550_v37 = vld [vmem:[#allocation5 + $0x294] sm:$0xf0] }
 0x155   :  { %2502 = vmatpush.bf16.msrb.mxu0 %v3758_v23  ;;  %v3678_v23 = vor.u32 %v4474_v14, %v3677_v21  ;;  %v3805_v21 = vld [vmem:[#allocation5 + $0x128] sm:$0xf]  ;;  %v3746_v14 = vor.u32 %v4488_v5, %v3743_v6 }
 0x156   :  { %2467 = vmatpush.bf16.msra.mxu1 %v3818_v41  ;;  %2476 = vmatpush.bf16.msra.mxu2 %v4010_v42  ;;  %v3775_v41 = vld [vmem:[#allocation5 + $0xf8] sm:$0xf0] }
 0x159   :  { %2503 = vmatpush.bf16.msrb.mxu0 %v3742_v43 }
 0x15a   :  { %2468 = vmatpush.bf16.msra.mxu1 %v3802_v48  ;;  %2477 = vmatpush.bf16.msra.mxu2 %v3994_v36  ;;  %v3778_v48 = vor.u32 %v4496_v39, %v3775_v41  ;;  %v4151_v36 = vld [vmem:[#allocation5 + $0x3f0] sm:$0xf0]  ;;  %v4480_v39 = vld [vmem:[#allocation5 + $0x6c] sm:$0xf]  ;;  %v3711_v41 = vld [vmem:[#allocation5 + $0x78] sm:$0xf0] }
 0x15b   :  { %v4154_v59 = vor.u32 %v4591_v30, %v4151_v36  ;;  %v3965_v30 = vld [vmem:[#allocation5 + $0x268] sm:$0xf]  ;;  %v4546_v36 = vld [vmem:[#allocation5 + $0x274] sm:$0xf0] }
 0x15c   :  { %v1252_v58 = vpop.f32.mrf.mxu0  ;;  %v1265_v61 = vpop.f32.mrf.mxu1  ;;  %v3966_v57 = vor.u32 %v4546_v36, %v3965_v30  ;;  %v4504_v30 = vld [vmem:[#allocation5 + $0x12c] sm:$0xf]  ;;  %v3807_v36 = vld [vmem:[#allocation5 + $0x138] sm:$0xf0] }
 0x15d   :  { %2504 = vmatpush.bf16.msrb.mxu0 %v3726_v49  ;;  %v1253_v51 = vadd.f32 %v1252_v58, %v442_v27  ;;  %v3837_v49 = vld [vmem:[#allocation5 + $0x168] sm:$0xf]  ;;  %v3914_v58 = vor.u32 %v4531_v46, %v3911_v2  ;;  %v4135_v27 = vld [vmem:[#allocation5 + $0x3d0] sm:$0xf0]  ;;  %v4575_v2 = vld [vmem:[#allocation5 + $0x364] sm:$0xf] }
 0x15e   :  { %2469 = vmatpush.bf16.msra.mxu1 %v3786_v52  ;;  %2478 = vmatpush.bf16.msra.mxu2 %v3978_v26  ;;  %v4030_v52 = vor.u32 %v4562_v54, %v4029_v53  ;;  %v3821_v26 = vld [vmem:[#allocation5 + $0x148] sm:$0xf]  ;;  %v4524_v53 = vld [vmem:[#allocation5 + $0x1cc] sm:$0xf]  ;;  %v3887_v54 = vld [vmem:[#allocation5 + $0x1d8] sm:$0xf0] }
 0x15f   :  { %v1266_v28 = vadd.f32 %v1265_v61, %v1253_v51  ;;  %v3838_v61 = vor.u32 %v4514_v50, %v3837_v49  ;;  %v4014_v51 = vor.u32 %v4558_v4, %v4013_v3  ;;  %v4476_v49 = vld [vmem:[#allocation5 + $0x4c] sm:$0xf]  ;;  %v3695_v50 = vld [vmem:[#allocation5 + $0x58] sm:$0xf0]  ;;  %v4567_v4 = vld [vmem:[#allocation5 + $0x324] sm:$0xf] }
 0x161   :  { %2505 = vmatpush.bf16.msrb.mxu0 %v3710_v63  ;;  %2470 = vmatmul.bf16.vlgmr.msra.gmra.mxu1 %v5036_v19 }
 0x162   :  { %2514 = vmatpush.bf16.msrb.mxu1 %v3902_v1  ;;  %2431 = vmatmul.bf16.vlgmr.msrb.gmra.mxu2 %v5043_v11  ;;  %v4510_v1 = vld [vmem:[#allocation5 + $0x154] sm:$0xf0] }
 0x163   :  { %2479 = vmatpush.bf16.msra.mxu2 %v3962_v8  ;;  %v100_v8 = vperm.slane %v5031_v40, 7  ;;  %v3822_v10 = vor.u32 %v4510_v1, %v3821_v26  ;;  %v3679_v26 = vld [vmem:[#allocation5 + $0x38] sm:$0xf0] }
 0x164   :  { %v1254_v15 = vpop.f32.mrf.mxu0  ;;  %v1267_v18 = vpop.f32.mrf.mxu1 }
 0x165   :  { %2506 = vmatpush.bf16.msrb.mxu0 %v3694_v9  ;;  %v4138_v9 = vor.u32 %v4587_v62, %v4135_v27  ;;  %v4506_v15 = vld [vmem:[#allocation5 + $0x134] sm:$0xf0]  ;;  %v4484_v18 = vld [vmem:[#allocation5 + $0x8c] sm:$0xf]  ;;  %v294_v24 = vadd.f32 %v4914_v38, %v100_v8  ;;  %v3790_v38 = vor.u32 %v4502_v33, %v3789_v32  ;;  %v3933_v8 = vld [vmem:[#allocation5 + $0x228] sm:$0xf] }
 0x166   :  { %2515 = vmatpush.bf16.msrb.mxu1 %v3886_v12  ;;  %v4583_v12 = vld [vmem:[#allocation5 + $0x3a4] sm:$0xf]  ;;  %v3806_v25 = vor.u32 %v4506_v15, %v3805_v21  ;;  %v4542_v62 = vld [vmem:[#allocation5 + $0x254] sm:$0xf0]  ;;  %v4472_v27 = vld [vmem:[#allocation5 + $0x2c] sm:$0xf] }
 0x167   :  { %v1278_v35 = vpop.f32.mrf.mxu2  ;;  %v1291_v43 = vpop.f32.mrf.mxu3  ;;  %2480 = vmatpush.bf16.msra.mxu2 %v3946_v20  ;;  %v3727_v20 = vld [vmem:[#allocation5 + $0x98] sm:$0xf0]  ;;  %v4122_v40 = vor.u32 %v4583_v12, %v4119_v13  ;;  %v3682_v5 = vor.u32 %v4472_v27, %v3679_v26  ;;  %v4516_v12 = vld [vmem:[#allocation5 + $0x18c] sm:$0xf]  ;;  %v4563_v15 = vld [vmem:[#allocation5 + $0x304] sm:$0xf] }
 0x168   :  { %v1279_v42 = vadd.f32 %v1278_v35, %v1266_v28  ;;  %v3998_v28 = vor.u32 %v4554_v17, %v3997_v16  ;;  %v3730_v34 = vor.u32 %v4484_v18, %v3727_v20  ;;  %v3981_v35 = vld [vmem:[#allocation5 + $0x288] sm:$0xf]  ;;  %v3855_v13 = vld [vmem:[#allocation5 + $0x198] sm:$0xf0]  ;;  %v4039_v16 = vld [vmem:[#allocation5 + $0x310] sm:$0xf0] }
 0x169   :  { %2507 = vmatpush.bf16.msrb.mxu0 %v3678_v23  ;;  %v4579_v23 = vld [vmem:[#allocation5 + $0x384] sm:$0xf]  ;;  %v3982_v46 = vor.u32 %v4550_v37, %v3981_v35  ;;  %v3917_v17 = vld [vmem:[#allocation5 + $0x208] sm:$0xf]  ;;  %v3858_v20 = vor.u32 %v4516_v12, %v3855_v13  ;;  %v4560_v32 = vld [vmem:[#allocation5 + $0x2ec] sm:$0xf] }
 0x16a   :  { %v1292_v7 = vadd.f32 %v1291_v43, %v1279_v42  ;;  %2516 = vmatpush.bf16.msrb.mxu1 %v3870_v31  ;;  %v4103_v31 = vld [vmem:[#allocation5 + $0x390] sm:$0xf0]  ;;  %v4528_v42 = vld [vmem:[#allocation5 + $0x1ec] sm:$0xf]  ;;  %v3903_v43 = vld [vmem:[#allocation5 + $0x1f8] sm:$0xf0] }
 0x16b   :  { %2481 = vmatpush.bf16.msra.mxu2 %v3930_v44  ;;  %v4106_v44 = vor.u32 %v4579_v23, %v4103_v31  ;;  %v4157_v23 = vld [vmem:[#allocation5 + $0x3e8] sm:$0xf]  ;;  %v4042_v31 = vor.u32 %v4563_v15, %v4039_v16  ;;  %v4031_v33 = vld [vmem:[#allocation5 + $0x2f8] sm:$0xf0]  ;;  %v4578_v26 = vld [vmem:[#allocation5 + $0x374] sm:$0xf0] }
 0x16c   :  { %v1298_v55 = vmax.f32 %v1292_v7, 0.0  ;;  %v4087_v7 = vld [vmem:[#allocation5 + $0x370] sm:$0xf0]  ;;  %v4093_v27 = vld [vmem:[#allocation5 + $0x368] sm:$0xf] }
 0x16d   :  { %2508 = vmatpush.bf16.msrb.mxu0 %v3662_v45  ;;  %v304_v45 = vmax.f32 %v294_v24, 0.0  ;;  %v4594_v24 = vld [vmem:[#allocation5 + $0x3f4] sm:$0xf0]  ;;  %v4536_v13 = vld [vmem:[#allocation5 + $0x22c] sm:$0xf] }
 0x16e   :  { %v1302_v60 = vpack.c.bf16 %v1298_v55, %v1298_v55  ;;  %2517 = vmatpush.bf16.msrb.mxu1 %v3854_v47  ;;  %v3714_v47 = vor.u32 %v4480_v39, %v3711_v41  ;;  %v4090_v55 = vor.u32 %v4575_v2, %v4087_v7  ;;  %v4158_v35 = vor.u32 %v4594_v24, %v4157_v23  ;;  %v4141_v39 = vld [vmem:[#allocation5 + $0x3c8] sm:$0xf]  ;;  %v4590_v41 = vld [vmem:[#allocation5 + $0x3d4] sm:$0xf0]  ;;  %v3919_v23 = vld [vmem:[#allocation5 + $0x218] sm:$0xf0] }
 0x16f   :  { %v1280_v63 = vpop.f32.mrf.mxu2  ;;  %v1293_v22 = vpop.f32.mrf.mxu3  ;;  %2482 = vmatpush.bf16.msra.mxu2 %v3914_v58  ;;  %v5051_v56 = vpack.c.bf16 %v304_v45, %v304_v45  ;;  %v4571_v58 = vld [vmem:[#allocation5 + $0x344] sm:$0xf]  ;;  %v4556_v45 = vld [vmem:[#allocation5 + $0x2cc] sm:$0xf]  ;;  %v4125_v7 = vld [vmem:[#allocation5 + $0x3a8] sm:$0xf] }
 0x170   :  { %1610 = vmatmul.bf16.vlgmr.msra.gmra.mxu3 %v1302_v60  ;;  %2509 = vmatmul.bf16.vlgmr.msrb.gmra.mxu0 %v5025_v29  ;;  %v3698_v60 = vor.u32 %v4476_v49, %v3695_v50  ;;  %v4520_v63 = vld [vmem:[#allocation5 + $0x1ac] sm:$0xf]  ;;  %v4055_v22 = vld [vmem:[#allocation5 + $0x330] sm:$0xf0]  ;;  %v3999_v50 = vld [vmem:[#allocation5 + $0x2b8] sm:$0xf0] }
 0x171   :  { %2553 = vmatpush.bf16.msra.mxu0 %v3778_v48  ;;  %2488 = vmatpush.bf16.msra.mxu3 %v4154_v59  ;;  %v3906_v48 = vor.u32 %v4528_v42, %v3903_v43  ;;  %v4071_v59 = vld [vmem:[#allocation5 + $0x350] sm:$0xf0]  ;;  %v4058_v21 = vor.u32 %v4567_v4, %v4055_v22  ;;  %v4034_v42 = vor.u32 %v4560_v32, %v4031_v33  ;;  %v4508_v43 = vld [vmem:[#allocation5 + $0x14c] sm:$0xf]  ;;  %v4077_v4 = vld [vmem:[#allocation5 + $0x348] sm:$0xf] }
 0x172   :  { %2518 = vmatpush.bf16.msrb.mxu1 %v3838_v61  ;;  %2483 = vmatmul.bf16.vlgmr.msra.gmra.mxu2 %v5043_v11  ;;  %v3890_v61 = vor.u32 %v4524_v53, %v3887_v54  ;;  %v4074_v1 = vor.u32 %v4571_v58, %v4071_v59  ;;  %v4552_v49 = vld [vmem:[#allocation5 + $0x2ac] sm:$0xf]  ;;  %v3810_v54 = vor.u32 %v4504_v30, %v3807_v36  ;;  %v3791_v59 = vld [vmem:[#allocation5 + $0x118] sm:$0xf0]  ;;  %v4574_v22 = vld [vmem:[#allocation5 + $0x354] sm:$0xf0] }
 0x173   :  { %2527 = vmatpush.bf16.msrb.mxu2 %v4030_v52  ;;  %v3949_v52 = vld [vmem:[#allocation5 + $0x248] sm:$0xf]  ;;  %v4500_v58 = vld [vmem:[#allocation5 + $0x10c] sm:$0xf]  ;;  %v4566_v16 = vld [vmem:[#allocation5 + $0x314] sm:$0xf0] }
 0x174   :  { %v3950_v3 = vor.u32 %v4542_v62, %v3949_v52  ;;  %v3794_v62 = vor.u32 %v4500_v58, %v3791_v59  ;;  %v4045_v15 = vld [vmem:[#allocation5 + $0x308] sm:$0xf]  ;;  %v4584_v33 = vld [vmem:[#allocation5 + $0x3ac] sm:$0xf] }
 0x175   :  { %2554 = vmatpush.bf16.msra.mxu0 %v3762_v0  ;;  %2489 = vmatpush.bf16.msra.mxu3 %v4138_v9  ;;  %v3871_v0 = vld [vmem:[#allocation5 + $0x1b8] sm:$0xf0]  ;;  %v4538_v9 = vld [vmem:[#allocation5 + $0x234] sm:$0xf0]  ;;  %v4046_v24 = vor.u32 %v4566_v16, %v4045_v15 }
 0x176   :  { %2519 = vmatpush.bf16.msrb.mxu1 %v3822_v10  ;;  %v3874_v6 = vor.u32 %v4520_v63, %v3871_v0  ;;  %v4468_v10 = vld [vmem:[#allocation5 + $0xc] sm:$0xf] }
 0x177   :  { %2528 = vmatpush.bf16.msrb.mxu2 %v4014_v51  ;;  %v3663_v51 = vld [vmem:[#allocation5 + $0x18] sm:$0xf0]  ;;  %v4544_v0 = vld [vmem:[#allocation5 + $0x26c] sm:$0xf] }
 0x178   :  { %v3666_v18 = vor.u32 %v4468_v10, %v3663_v51  ;;  %v4061_v10 = vld [vmem:[#allocation5 + $0x328] sm:$0xf]  ;;  %v4570_v51 = vld [vmem:[#allocation5 + $0x334] sm:$0xf0] }
 0x179   :  { %2555 = vmatpush.bf16.msra.mxu0 %v3746_v14  ;;  %2490 = vmatpush.bf16.msra.mxu3 %v4122_v40  ;;  %v3934_v14 = vor.u32 %v4538_v9, %v3933_v8  ;;  %v4534_v40 = vld [vmem:[#allocation5 + $0x214] sm:$0xf0]  ;;  %v3951_v8 = vld [vmem:[#allocation5 + $0x258] sm:$0xf0]  ;;  %v4078_v9 = vor.u32 %v4574_v22, %v4077_v4  ;;  %v4596_v22 = vld [vmem:[%s5197_s9 + $0x8] sm:$0xff] }
 0x17a   :  { %2520 = vmatpush.bf16.msrb.mxu1 %v3806_v25  ;;  %v4512_v25 = vld [vmem:[#allocation5 + $0x16c] sm:$0xf] }
 0x17b   :  { %2529 = vmatpush.bf16.msrb.mxu2 %v3998_v28  ;;  %v3839_v28 = vld [vmem:[#allocation5 + $0x178] sm:$0xf0] }
 0x17c   :  { %v3842_v37 = vor.u32 %v4512_v25, %v3839_v28  ;;  %v4588_v28 = vld [vmem:[#allocation5 + $0x3cc] sm:$0xf] }
 0x17d   :  { %2556 = vmatpush.bf16.msra.mxu0 %v3730_v34  ;;  %2491 = vmatpush.bf16.msra.mxu3 %v4106_v44  ;;  %v3918_v34 = vor.u32 %v4534_v40, %v3917_v17  ;;  %v3823_v44 = vld [vmem:[#allocation5 + $0x158] sm:$0xf0]  ;;  %v4532_v40 = vld [vmem:[#allocation5 + $0x20c] sm:$0xf] }
 0x17e   :  { %2521 = vmatpush.bf16.msrb.mxu1 %v3790_v38  ;;  %v4015_v38 = vld [vmem:[#allocation5 + $0x2d8] sm:$0xf0]  ;;  %v3826_v2 = vor.u32 %v4508_v43, %v3823_v44  ;;  %v3922_v25 = vor.u32 %v4532_v40, %v3919_v23  ;;  %v4576_v43 = vld [vmem:[#allocation5 + $0x36c] sm:$0xf] }
 0x17f   :  { %2530 = vmatpush.bf16.msrb.mxu2 %v3982_v46  ;;  %v4142_v46 = vor.u32 %v4590_v41, %v4141_v39  ;;  %v4580_v39 = vld [vmem:[#allocation5 + $0x38c] sm:$0xf]  ;;  %v4111_v41 = vld [vmem:[#allocation5 + $0x398] sm:$0xf0] }
 0x180   :  { %2444 = vmatmul.bf16.vlgmr.msrb.gmra.mxu3 %v5051_v56  ;;  %v4095_v44 = vld [vmem:[#allocation5 + $0x378] sm:$0xf0] }
 0x181   :  { %2557 = vmatpush.bf16.msra.mxu0 %v3714_v47  ;;  %2492 = vmatpush.bf16.msra.mxu3 %v4090_v55  ;;  %v4586_v47 = vld [vmem:[#allocation5 + $0x3b4] sm:$0xf0]  ;;  %v4109_v55 = vld [vmem:[#allocation5 + $0x388] sm:$0xf] }
 0x182   :  { %2566 = vmatpush.bf16.msra.mxu1 %v3906_v48  ;;  %v4018_v48 = vor.u32 %v4556_v45, %v4015_v38  ;;  %v4126_v53 = vor.u32 %v4586_v47, %v4125_v7  ;;  %v4098_v45 = vor.u32 %v4576_v43, %v4095_v44  ;;  %v4568_v47 = vld [vmem:[#allocation5 + $0x32c] sm:$0xf]  ;;  %v4615_v44 = vld [vmem:[%s5197_s9 + $0xa0] sm:$0xff] }
 0x183   :  { %2522 = vmatmul.bf16.vlgmr.msrb.gmra.mxu1 %v5036_v19  ;;  %2531 = vmatpush.bf16.msrb.mxu2 %v3966_v57  ;;  %v4002_v57 = vor.u32 %v4552_v49, %v3999_v50  ;;  %v4564_v49 = vld [vmem:[#allocation5 + $0x30c] sm:$0xf]  ;;  %v4047_v50 = vld [vmem:[#allocation5 + $0x318] sm:$0xf0] }
 0x185   :  { %2558 = vmatpush.bf16.msra.mxu0 %v3698_v60  ;;  %2493 = vmatpush.bf16.msra.mxu3 %v4074_v1  ;;  %v4548_v60 = vld [vmem:[#allocation5 + $0x28c] sm:$0xf]  ;;  %v3967_v1 = vld [vmem:[#allocation5 + $0x278] sm:$0xf0] }
 0x186   :  { %2567 = vmatpush.bf16.msra.mxu1 %v3890_v61  ;;  %v3983_v61 = vld [vmem:[#allocation5 + $0x298] sm:$0xf0] }
 0x187   :  { %2532 = vmatpush.bf16.msrb.mxu2 %v3950_v3  ;;  %v3986_v63 = vor.u32 %v4548_v60, %v3983_v61  ;;  %v4094_v3 = vor.u32 %v4578_v26, %v4093_v27  ;;  %v4600_v60 = vld [vmem:[%s5197_s9 + $0x28] sm:$0xff]  ;;  %v4692_v61 = vmov 0   ;;  %v4598_v26 = vld [vmem:[%s5197_s9 + $0x18] sm:$0xff] }
 0x188   :  { %4632 = vset.pattern.permute.xlu0 %v4692_v61 }
 0x189   :  { %2559 = vmatpush.bf16.msra.mxu0 %v3682_v5  ;;  %2494 = vmatpush.bf16.msra.mxu3 %v4058_v21  ;;  %v3970_v5 = vor.u32 %v4544_v0, %v3967_v1  ;;  %v3935_v21 = vld [vmem:[#allocation5 + $0x238] sm:$0xf0]  ;;  %v4597_v1 = vld [vmem:[%s5197_s9 + $0x10] sm:$0xff] }
 0x18a   :  { %2568 = vmatpush.bf16.msra.mxu1 %v3874_v6  ;;  %v4540_v6 = vld [vmem:[#allocation5 + $0x24c] sm:$0xf]  ;;  %v3938_v17 = vor.u32 %v4536_v13, %v3935_v21 }
 0x18b   :  { %2533 = vmatpush.bf16.msrb.mxu2 %v3934_v14  ;;  %v3954_v12 = vor.u32 %v4540_v6, %v3951_v8  ;;  %v4062_v14 = vor.u32 %v4570_v51, %v4061_v10  ;;  %v4595_v8 = vld [vmem:[%s5197_s9] sm:$0xff]  ;;  %v4605_v21 = vld [vmem:[%s5197_s9 + $0x50] sm:$0xff] }
 0x18c   :  { %v4633_v51 = vld [vmem:[#allocation2] ss:$0 sm:$0xff] }
 0x18d   :  { %2560 = vmatpush.bf16.msra.mxu0 %v3666_v18  ;;  %2495 = vmatpush.bf16.msra.mxu3 %v4042_v31  ;;  %v4592_v18 = vld [vmem:[#allocation5 + $0x3ec] sm:$0xf]  ;;  %v4143_v31 = vld [vmem:[#allocation5 + $0x3d8] sm:$0xf0] }
 0x18e   :  { %2569 = vmatpush.bf16.msra.mxu1 %v3858_v20  ;;  %v4159_v20 = vld [vmem:[#allocation5 + $0x3f8] sm:$0xf0]  ;;  %v4146_v32 = vor.u32 %v4588_v28, %v4143_v31 }
 0x18f   :  { %2534 = vmatpush.bf16.msrb.mxu2 %v3918_v34  ;;  %v4127_v34 = vld [vmem:[#allocation5 + $0x3b8] sm:$0xf0] }
 0x190   :  { %2561 = vmatmul.bf16.vlgmr.msra.gmra.mxu0 %v5025_v29  ;;  %2496 = vmatmul.bf16.vlgmr.msra.gmra.mxu3 %v5051_v56  ;;  %v4582_v29 = vld [vmem:[#allocation5 + $0x394] sm:$0xf0] }
 0x191   :  { %2540 = vmatpush.bf16.msrb.mxu3 %v4158_v35  ;;  %v4110_v52 = vor.u32 %v4582_v29, %v4109_v55  ;;  %v4130_v35 = vor.u32 %v4584_v33, %v4127_v34  ;;  %v4602_v29 = vld [vmem:[%s5197_s9 + $0x38] sm:$0xff]  ;;  %v4617_v33 = vld [vmem:[%s5197_s9 + $0xb0] sm:$0xff]  ;;  %v4616_v34 = vld [vmem:[%s5197_s9 + $0xa8] sm:$0xff] }
 0x192   :  { %2570 = vmatpush.bf16.msra.mxu1 %v3842_v37  ;;  %2535 = vmatmul.bf16.vlgmr.msrb.gmra.mxu2 %v5043_v11  ;;  %v4618_v28 = vld [vmem:[%s5197_s9 + $0xb8] sm:$0xff] }
 0x193   :  { %2579 = vmatpush.bf16.msra.mxu2 %v4034_v42  ;;  %v4114_v42 = vor.u32 %v4580_v39, %v4111_v41  ;;  %2873 = vmatpush.bf16.msrb.mxu0 %v4602_v29 }
 0x195   :  { %2541 = vmatpush.bf16.msrb.mxu3 %v4142_v46  ;;  %v4572_v46 = vld [vmem:[#allocation5 + $0x34c] sm:$0xf] }
 0x196   :  { %2571 = vmatpush.bf16.msra.mxu1 %v3826_v2  ;;  %v4079_v2 = vld [vmem:[#allocation5 + $0x358] sm:$0xf0] }
 0x197   :  { %2580 = vmatpush.bf16.msra.mxu2 %v4018_v48  ;;  %v4082_v7 = vor.u32 %v4572_v46, %v4079_v2  ;;  %v4063_v48 = vld [vmem:[#allocation5 + $0x338] sm:$0xf0] }
 0x199   :  { %2542 = vmatpush.bf16.msrb.mxu3 %v4126_v53  ;;  %v4050_v53 = vor.u32 %v4564_v49, %v4047_v50  ;;  %v4612_v49 = vld [vmem:[%s5197_s9 + $0x88] sm:$0xff] }
 0x19a   :  { %2572 = vmatpush.bf16.msra.mxu1 %v3810_v54 }
 0x19b   :  { %2581 = vmatpush.bf16.msra.mxu2 %v4002_v57  ;;  %v4601_v57 = vld [vmem:[%s5197_s9 + $0x30] sm:$0xff] }
 0x19c   :  { %2874 = vmatpush.bf16.msrb.mxu0 %v4601_v57 }
 0x19d   :  { %2543 = vmatpush.bf16.msrb.mxu3 %v4110_v52 }
 0x19e   :  { %2573 = vmatpush.bf16.msra.mxu1 %v3794_v62 }
 0x19f   :  { %2582 = vmatpush.bf16.msra.mxu2 %v3986_v63  ;;  %v4610_v63 = vld [vmem:[%s5197_s9 + $0x78] sm:$0xff] }
 0x1a0   :  { %2875 = vmatpush.bf16.msrb.mxu0 %v4600_v60 }
 0x1a1   :  { %2544 = vmatpush.bf16.msrb.mxu3 %v4094_v3  ;;  %2574 = vmatmul.bf16.vlgmr.msra.gmra.mxu1 %v5036_v19  ;;  %v4162_v19 = vor.u32 %v4592_v18, %v4159_v20  ;;  %v4609_v3 = vld [vmem:[%s5197_s9 + $0x70] sm:$0xff]  ;;  %v4604_v20 = vld [vmem:[%s5197_s9 + $0x48] sm:$0xff] }
 0x1a2   :  { %2886 = vmatpush.bf16.msrb.mxu1 %v4610_v63  ;;  %v4623_v63 = vld [vmem:[%s5197_s9 + $0xe0] sm:$0xff] }
 0x1a3   :  { %2583 = vmatpush.bf16.msra.mxu2 %v3970_v5  ;;  %v4608_v5 = vld [vmem:[%s5197_s9 + $0x68] sm:$0xff] }
 0x1a5   :  { %2545 = vmatpush.bf16.msrb.mxu3 %v4078_v9  ;;  %v4607_v9 = vld [vmem:[%s5197_s9 + $0x60] sm:$0xff] }
 0x1a6   :  { %2887 = vmatpush.bf16.msrb.mxu1 %v4609_v3  ;;  %v4621_v3 = vld [vmem:[%s5197_s9 + $0xd0] sm:$0xff] }
 0x1a7   :  { %2584 = vmatpush.bf16.msra.mxu2 %v3954_v12  ;;  %v4606_v12 = vld [vmem:[%s5197_s9 + $0x58] sm:$0xff] }
 0x1a9   :  { %2546 = vmatpush.bf16.msrb.mxu3 %v4062_v14 }
 0x1aa   :  { %2888 = vmatpush.bf16.msrb.mxu1 %v4608_v5  ;;  %v4620_v5 = vld [vmem:[%s5197_s9 + $0xc8] sm:$0xff] }
 0x1ab   :  { %2585 = vmatpush.bf16.msra.mxu2 %v3938_v17 }
 0x1ad   :  { %2547 = vmatpush.bf16.msrb.mxu3 %v4046_v24  ;;  %v5061_v37 = vpop.f32.mrf.mxu0  ;;  %v5121_v24 = vld [vmem:[%s5196_s8] sm:$0xf] }
 0x1ae   :  { %2889 = vmatpush.bf16.msrb.mxu1 %v4607_v9  ;;  %v1573_v14 = vadd.f32 %v4633_v51, %v5061_v37  ;;  %v1749_v31 = vperm.slane %v5121_v24, 0 }
 0x1af   :  { %2586 = vmatpush.bf16.msra.mxu2 %v3922_v25  ;;  %v4603_v25 = vld [vmem:[%s5197_s9 + $0x40] sm:$0xff] }
 0x1b0   :  { %2548 = vmatmul.bf16.vlgmr.msrb.gmra.mxu3 %v5051_v56 }
 0x1b1   :  { %2592 = vmatpush.bf16.msra.mxu3 %v4162_v19 }
 0x1b2   :  { %2587 = vmatmul.bf16.vlgmr.msra.gmra.mxu2 %v5043_v11  ;;  %v4066_v11 = vor.u32 %v4568_v47, %v4063_v48  ;;  %2890 = vmatpush.bf16.msrb.mxu1 %v4606_v12  ;;  %v4613_v47 = vld [vmem:[%s5197_s9 + $0x90] sm:$0xff]  ;;  %v1750_v48 = vperm.slane %v5121_v24, 1 }
 0x1b3   :  { %2899 = vmatpush.bf16.msrb.mxu2 %v4618_v28 }
 0x1b5   :  { %2593 = vmatpush.bf16.msra.mxu3 %v4146_v32  ;;  %v1574_v38 = vpop.f32.mrf.mxu0 }
 0x1b6   :  { %2891 = vmatpush.bf16.msrb.mxu1 %v4605_v21  ;;  %v4614_v38 = vld [vmem:[%s5197_s9 + $0x98] sm:$0xff] }
 0x1b7   :  { %2900 = vmatpush.bf16.msrb.mxu2 %v4617_v33 }
 0x1b9   :  { %2594 = vmatpush.bf16.msra.mxu3 %v4130_v35 }
 0x1ba   :  { %2892 = vmatpush.bf16.msrb.mxu1 %v4604_v20 }
 0x1bb   :  { %2901 = vmatpush.bf16.msrb.mxu2 %v4616_v34 }
 0x1bd   :  { %2595 = vmatpush.bf16.msra.mxu3 %v4114_v42  ;;  %v1585_v30 = vpop.f32.mrf.mxu1  ;;  %v5063_v36 = vpop.f32.mrf.mxu0 }
 0x1be   :  { %v1586_v16 = vadd.f32 %v1585_v30, %v1573_v14  ;;  %2893 = vmatpush.bf16.msrb.mxu1 %v4603_v25  ;;  %v2407_v35 = vadd.f32 %v5063_v36, %v1749_v31 }
 0x1bf   :  { %2902 = vmatpush.bf16.msrb.mxu2 %v4615_v44 }
 0x1c1   :  { %2596 = vmatpush.bf16.msra.mxu3 %v4098_v45 }
 0x1c3   :  { %2903 = vmatpush.bf16.msrb.mxu2 %v4614_v38 }
 0x1c5   :  { %2597 = vmatpush.bf16.msra.mxu3 %v4082_v7  ;;  %v1587_v54 = vpop.f32.mrf.mxu1  ;;  %v2408_v55 = vpop.f32.mrf.mxu0 }
 0x1c6   :  { %v4611_v55 = vld [vmem:[%s5197_s9 + $0x80] sm:$0xff] }
 0x1c7   :  { %2904 = vmatpush.bf16.msrb.mxu2 %v4613_v47 }
 0x1c9   :  { %2598 = vmatpush.bf16.msra.mxu3 %v4066_v11 }
 0x1cb   :  { %2905 = vmatpush.bf16.msrb.mxu2 %v4612_v49 }
 0x1cd   :  { %2599 = vmatpush.bf16.msra.mxu3 %v4050_v53  ;;  %v2419_v58 = vpop.f32.mrf.mxu1  ;;  %v5072_v59 = vpop.f32.mrf.mxu0 }
 0x1ce   :  { %v2420_v41 = vadd.f32 %v2419_v58, %v2407_v35  ;;  %v2459_v36 = vadd.f32 %v5072_v59, %v1750_v48  ;;  %v4626_v59 = vld [vmem:[%s5197_s9 + $0xf8] sm:$0xff] }
 0x1cf   :  { %2906 = vmatpush.bf16.msrb.mxu2 %v4611_v55 }
 0x1d0   :  { %2600 = vmatmul.bf16.vlgmr.msra.gmra.mxu3 %v5051_v56  ;;  %v4599_v56 = vld [vmem:[%s5197_s9 + $0x20] sm:$0xff] }
 0x1d1   :  { %2876 = vmatpush.bf16.msrb.mxu0 %v4599_v56  ;;  %2912 = vmatpush.bf16.msrb.mxu3 %v4626_v59  ;;  %v4624_v56 = vld [vmem:[%s5197_s9 + $0xe8] sm:$0xff] }
 0x1d4   :  { %v1598_v52 = vpop.f32.mrf.mxu2 }
 0x1d5   :  { %v2421_v62 = vpop.f32.mrf.mxu1  ;;  %v2460_v27 = vpop.f32.mrf.mxu0  ;;  %2877 = vmatpush.bf16.msrb.mxu0 %v4598_v26  ;;  %v1599_v17 = vadd.f32 %v1598_v52, %v1586_v16  ;;  %v4625_v52 = vld [vmem:[%s5197_s9 + $0xf0] sm:$0xff]  ;;  %v1752_v16 = vperm.slane %v5121_v24, 3 }
 0x1d6   :  { %2913 = vmatpush.bf16.msrb.mxu3 %v4625_v52 }
 0x1d9   :  { %2878 = vmatpush.bf16.msrb.mxu0 %v4597_v1 }
 0x1da   :  { %2914 = vmatpush.bf16.msrb.mxu3 %v4624_v56 }
 0x1dc   :  { %v1600_v0 = vpop.f32.mrf.mxu2 }
 0x1dd   :  { %2879 = vmatpush.bf16.msrb.mxu0 %v4596_v22  ;;  %v4622_v0 = vld [vmem:[%s5197_s9 + $0xd8] sm:$0xff] }
 0x1de   :  { %v5092_v4 = vpop.f32.mrf.mxu1  ;;  %2915 = vmatpush.bf16.msrb.mxu3 %v4623_v63 }
 0x1df   :  { %v2472_v50 = vadd.f32 %v5092_v4, %v2459_v36  ;;  %v1751_v4 = vperm.slane %v5121_v24, 2 }
 0x1e1   :  { %2880 = vmatpush.bf16.msrb.mxu0 %v4595_v8 }
 0x1e2   :  { %2916 = vmatpush.bf16.msrb.mxu3 %v4622_v0 }
 0x1e5   :  { %v2432_v6 = vpop.f32.mrf.mxu2 }
 0x1e6   :  { %v2473_v10 = vpop.f32.mrf.mxu1  ;;  %v2433_v42 = vadd.f32 %v2432_v6, %v2420_v41  ;;  %2917 = vmatpush.bf16.msrb.mxu3 %v4621_v3 }
 0x1e7   :  { %v4619_v10 = vld [vmem:[%s5197_s9 + $0xc0] sm:$0xff] }
 0x1ea   :  { %2918 = vmatpush.bf16.msrb.mxu3 %v4620_v5 }
 0x1ed   :  { %v5109_v13 = vpop.f32.mrf.mxu0  ;;  %v2434_v15 = vpop.f32.mrf.mxu2 }
 0x1ee   :  { %v2511_v22 = vadd.f32 %v5109_v13, %v1751_v4  ;;  %2919 = vmatpush.bf16.msrb.mxu3 %v4619_v10 }
 0x1f3   :  { %v1611_v18 = vpop.f32.mrf.mxu3 }
 0x1f4   :  { %v1612_v40 = vadd.f32 %v1611_v18, %v1599_v17 }
 0x1f5   :  { %v2512_v23 = vpop.f32.mrf.mxu0  ;;  %v2484_v19 = vpop.f32.mrf.mxu2 }
 0x1f6   :  { %2927 = vperm.xlu0 %4632, %v1612_v40   ;;  %v2485_v53 = vadd.f32 %v2484_v19, %v2472_v50 }
 0x1fb   :  { %v1613_v32 = vpop.f32.mrf.mxu3 }
 0x1fd   :  { %v2486_v39 = vpop.f32.mrf.mxu2 }
 0x1fe   :  { %v4634_v39 = vld [vmem:[%s5198_s10] ss:$0 sm:$0xff] }
 0x200   :  { %v2523_v37 = vpop.f32.mrf.mxu1 }
 0x201   :  { %v2524_v6 = vadd.f32 %v2523_v37, %v2511_v22 }
 0x203   :  { %v2445_v43 = vpop.f32.mrf.mxu3 }
 0x204   :  { %v2446_v45 = vadd.f32 %v2445_v43, %v2433_v42 }
 0x206   :  { %v2605_v46 = vmax.f32 %v2446_v45, 0.0 }
 0x208   :  { %v2525_v2 = vpop.f32.mrf.mxu1  ;;  %v2609_v7 = vpack.c.bf16 %v2605_v46, %v2605_v46 }
 0x20a   :  { %2881 = vmatmul.bf16.vlgmr.msrb.gmra.mxu0 %v2609_v7 }
 0x20b   :  { %v2447_v11 = vpop.f32.mrf.mxu3 }
 0x20d   :  { %v2562_v30 = vpop.f32.mrf.mxu0 }
 0x20e   :  { %v2563_v17 = vadd.f32 %v2562_v30, %v1752_v16 }
 0x213   :  { %v2497_v54 = vpop.f32.mrf.mxu3 }
 0x214   :  { %v2498_v57 = vadd.f32 %v2497_v54, %v2485_v53 }
 0x215   :  { %v2564_v29 = vpop.f32.mrf.mxu0  ;;  %v2536_v58 = vpop.f32.mrf.mxu2 }
 0x216   :  { %v2606_v60 = vmax.f32 %v2498_v57, 0.0  ;;  %v2537_v8 = vadd.f32 %v2536_v58, %v2524_v6 }
 0x218   :  { %v2610_v61 = vpack.c.bf16 %v2606_v60, %v2606_v60 }
 0x21a   :  { %2894 = vmatmul.bf16.vlgmr.msrb.gmra.mxu1 %v2610_v61 }
 0x21b   :  { %v2499_v27 = vpop.f32.mrf.mxu3 }
 0x21d   :  { %v2538_v26 = vpop.f32.mrf.mxu2 }
 0x21e   :  { %v2575_v62 = vpop.f32.mrf.mxu1 }
 0x21f   :  { %v2576_v18 = vadd.f32 %v2575_v62, %v2563_v17 }
 0x226   :  { %v2577_v1 = vpop.f32.mrf.mxu1 }
 0x233   :  { %v2549_v9 = vpop.f32.mrf.mxu3 }
 0x234   :  { %v2550_v51 = vadd.f32 %v2549_v9, %v2537_v8 }
 0x235   :  { %v2588_v12 = vpop.f32.mrf.mxu2 }
 0x236   :  { %v2607_v21 = vmax.f32 %v2550_v51, 0.0  ;;  %v2589_v20 = vadd.f32 %v2588_v12, %v2576_v18 }
 0x238   :  { %v2611_v14 = vpack.c.bf16 %v2607_v21, %v2607_v21 }
 0x23a   :  { %2907 = vmatmul.bf16.vlgmr.msrb.gmra.mxu2 %v2611_v14 }
 0x23b   :  { %v2551_v15 = vpop.f32.mrf.mxu3 }
 0x23d   :  { %v2590_v13 = vpop.f32.mrf.mxu2 }
 0x253   :  { %v2601_v40 = vpop.f32.mrf.mxu3 }
 0x254   :  { %v2602_v23 = vadd.f32 %v2601_v40, %v2589_v20 }
 0x256   :  { %v2608_v19 = vmax.f32 %v2602_v23, 0.0 }
 0x258   :  { %v2612_v25 = vpack.c.bf16 %v2608_v19, %v2608_v19 }
 0x25a   :  { %2920 = vmatmul.bf16.vlgmr.msrb.gmra.mxu3 %v2612_v25 }
 0x25b   :  { %v2603_v28 = vpop.f32.mrf.mxu3 }
 0x268   :  { %v2928_v45 = vpop.permute.xlu0 %2927 }
 0x287   :  { %v2882_v31 = vpop.f32.mrf.mxu0 }
 0x288   :  { %v2883_v24 = vadd.f32 %v4634_v39, %v2882_v31 }
 0x28f   :  { %v2884_v32 = vpop.f32.mrf.mxu0 }
 0x297   :  { %v2895_v33 = vpop.f32.mrf.mxu1 }
 0x298   :  { %v2896_v41 = vadd.f32 %v2895_v33, %v2883_v24 }
 0x29f   :  { %v2897_v34 = vpop.f32.mrf.mxu1 }
 0x2bd   :  { %v2908_v35 = vpop.f32.mrf.mxu2 }
 0x2be   :  { %v2909_v42 = vadd.f32 %v2908_v35, %v2896_v41 }
 0x2c5   :  { %v2910_v37 = vpop.f32.mrf.mxu2 }
 0x2dd   :  { %v2921_v43 = vpop.f32.mrf.mxu3 }
 0x2de   :  { %v2922_v44 = vadd.f32 %v2921_v43, %v2909_v42 }
 0x2e0   :  { %v2930_v38 = vadd.f32 %v2928_v45, %v2922_v44 }
 0x2e2   :  { %2932 = vst.msk [vmem:[%s5199_s11] sm:$0xff] %vm2931_vm1, %v2930_v38 }
 0x2e5   :  { %v2923_v46 = vpop.f32.mrf.mxu3 }
 0x2e6   :  { %2937 = vsyncpa [#allocation4], 1 }
 0x2e7   :  { %2938 = vsyncpa [#allocation6], 1 }

</bundles_post_ra>
